<compile_context>
chip_gen: v7x
topology: tpu7x:2x2x1
jax: 0.10.0
libtpu: 0.0.40
codegen_flags: <defaults>
</compile_context>

<pallas_src>
import numpy as np
import jax
import jax.numpy as jnp
from jax.experimental import pallas as pl
from jax.experimental.pallas import tpu as pltpu

BN_EPS = 1e-5
LRELU_SLOPE = 0.2


# ---------------------------------------------------------------------------
# Static layer configuration (Python ints only — never traced).
# ---------------------------------------------------------------------------
def _layer_configs(input_channels, hidden_channels):
    c, h = input_channels, hidden_channels
    return [
        dict(cin=c,     cout=h,     k=4, stride=2, pad=1, bn=True),
        dict(cin=h,     cout=2 * h, k=4, stride=2, pad=1, bn=True),
        dict(cin=2 * h, cout=4 * h, k=3, stride=2, pad=1, bn=True),
        dict(cin=4 * h, cout=1,     k=4, stride=1, pad=0, bn=False),
    ]


# ---------------------------------------------------------------------------
# Host-side lowering of Conv2d into (R_i, Q_i) matmul operators.
# ---------------------------------------------------------------------------
def _row_select(n, h_in, h_out, k, stride, pad):
    """R[i]: [N*Ho, N*H] 0/1 selector for row tap i (stride + zero pad in H)."""
    r = np.zeros((k, n * h_out, n * h_in), np.float32)
    for i in range(k):
        for b in range(n):
            for ho in range(h_out):
                src = stride * ho + i - pad
                if 0 <= src < h_in:
                    r[i, b * h_out + ho, b * h_in + src] = 1.0
    return r


def _col_operator(w_in, w_out, k, stride, pad, weight):
    """Q[i]: [W*Cin, Wo*Cout] banded operator embedding the conv weights."""
    kh, kw, cin, cout = weight.shape
    s = np.zeros((kw, w_in, w_out), np.float32)
    for j in range(kw):
        for wo in range(w_out):
            src = stride * wo + j - pad
            if 0 <= src < w_in:
                s[j, src, wo] = 1.0
    q = jnp.einsum('jwv,ijco->iwcvo', jnp.asarray(s), weight)
    return q.reshape(kh, w_in * cin, w_out * cout)


def build_discriminator(key, input_channels, hidden_channels, n, h, w):
    """Deterministic synthetic params, lowered to kernel operands."""
    cfgs = _layer_configs(input_channels, hidden_channels)
    operands, metas = [], []
    cur_h, cur_w = h, w
    for cfg in cfgs:
        k, s, p = cfg["k"], cfg["stride"], cfg["pad"]
        cin, cout, bn = cfg["cin"], cfg["cout"], cfg["bn"]
        h_out = (cur_h + 2 * p - k) // s + 1
        w_out = (cur_w + 2 * p - k) // s + 1

        key, kw_ = jax.random.split(key)
        weight = jax.random.normal(kw_, (k, k, cin, cout), jnp.float32) * 0.05

        r_op = jnp.asarray(_row_select(n, cur_h, h_out, k, s, p), jnp.bfloat16)
        q_op = _col_operator(cur_w, w_out, k, s, p, weight).astype(jnp.bfloat16)

        if bn:
            # Conv bias before BatchNorm is mathematically cancelled -> dropped.
            key, kg, kb = jax.random.split(key, 3)
            gamma = 1.0 + 0.1 * jax.random.normal(kg, (1, cout), jnp.float32)
            beta = 0.1 * jax.random.normal(kb, (1, cout), jnp.float32)
            pool = jnp.asarray(np.tile(np.eye(cout, dtype=np.float32), (w_out, 1)))
            operands += [r_op, q_op, pool, pool.T, gamma, beta]
        else:
            key, kb = jax.random.split(key)
            bias = 0.05 * jax.random.normal(kb, (1, cout), jnp.float32)
            operands += [r_op, q_op, bias]

        metas.append(dict(k=k, bn=bn, inv_count=1.0 / float(n * h_out * w_out)))
        cur_h, cur_w = h_out, w_out

    out_shape2d = (n * cur_h, cur_w * cfgs[-1]["cout"])
    return operands, metas, out_shape2d


# ---------------------------------------------------------------------------
# Fused Pallas kernel: all 4 layers, activations VMEM/register resident.
# ---------------------------------------------------------------------------
def _make_fused_kernel(metas):
    def kernel(*refs):
        x_ref, out_ref = refs[0], refs[-1]
        a = x_ref[...]                                   # [N*H, W*C], f32
        idx = 1
        for meta in metas:
            kh, bn = meta["k"], meta["bn"]
            if bn:
                r_ref, q_ref, p_ref, pt_ref, g_ref, beta_ref = refs[idx:idx + 6]
                idx += 6
            else:
                r_ref, q_ref, bias_ref = refs[idx:idx + 3]
                idx += 3

            # Conv: out = sum_i R_i @ A @ Q_i   (bf16 MXU matmuls, f32 accum)
            a16 = a.astype(jnp.bfloat16)
            acc = None
            for i in range(kh):
                sel = jnp.dot(r_ref[i], a16,
                              preferred_element_type=jnp.float32)
                term = jnp.dot(sel.astype(jnp.bfloat16), q_ref[i],
                               preferred_element_type=jnp.float32)
                acc = term if acc is None else acc + term

            if bn:
                # One-pass batch stats (sum / sumsq), channel pooling on MXU,
                # BN folded to a single per-channel scale/shift (f32 math).
                inv = meta["inv_count"]
                col_sum = jnp.sum(acc, axis=0, keepdims=True)
                col_sq = jnp.sum(acc * acc, axis=0, keepdims=True)
                mean = jnp.dot(col_sum, p_ref[...],
                               preferred_element_type=jnp.float32) * inv
                ex2 = jnp.dot(col_sq, p_ref[...],
                              preferred_element_type=jnp.float32) * inv
                var = jnp.maximum(ex2 - mean * mean, 0.0)
                scale = g_ref[...] * jax.lax.rsqrt(var + BN_EPS)
                shift = beta_ref[...] - mean * scale
                scale_cols = jnp.dot(scale, pt_ref[...],
                                     preferred_element_type=jnp.float32)
                shift_cols = jnp.dot(shift, pt_ref[...],
                                     preferred_element_type=jnp.float32)
                z = acc * scale_cols + shift_cols
                a = jnp.where(z >= 0.0, z, LRELU_SLOPE * z)   # LeakyReLU(0.2)
            else:
                y = acc + bias_ref[...]
                a = 1.0 / (1.0 + jnp.exp(-y))                 # Sigmoid

        out_ref[...] = a.astype(out_ref.dtype)
    return kernel


def make_forward(operands, metas, out_shape2d, batch):
    kernel = _make_fused_kernel(metas)
    vmem = pl.BlockSpec(memory_space=pltpu.MemorySpace.VMEM)
    n_inputs = 1 + len(operands)

    fused = pl.pallas_call(
        kernel,
        out_shape=jax.ShapeDtypeStruct(out_shape2d, jnp.float32),
        in_specs=[vmem] * n_inputs,
        out_specs=vmem,
        compiler_params=pltpu.CompilerParams(
            vmem_limit_bytes=32 * 1024 * 1024),
    )

    @jax.jit
    def forward(x_nchw):
        n, c, h, w = x_nchw.shape
        # NCHW -> [N*H, W*C] 2-D layout consumed directly by the fused kernel.
        x2d = jnp.transpose(x_nchw, (0, 2, 3, 1)).reshape(n * h, w * c)
        out = fused(x2d.astype(jnp.float32), *operands)
        return out.reshape(batch, 1, 1, 1)     # NCHW [N,1,1,1] like PyTorch

    return forward


# ---------------------------------------------------------------------------
if __name__ == "__main__":
    key = jax.random.PRNGKey(0)
    k_x, k_p = jax.random.split(key)

    N, C_IN, HID, S = 2, 3, 8, 32            # 32 -> 16 -> 8 -> 4 -> 1
    x = jax.random.normal(k_x, (N, C_IN, S, S), jnp.float32)

    operands, metas, out2d = build_discriminator(k_p, C_IN, HID, N, S, S)
    forward = make_forward(operands, metas, out2d, N)

    out = jax.block_until_ready(forward(x))

    assert out.shape == (N, 1, 1, 1), out.shape
    assert bool(jnp.all(jnp.isfinite(out)))
    assert bool(jnp.all((out >= 0.0) & (out <= 1.0)))   # sigmoid range
    print("KERNEL_OK")
</pallas_src>

<mosaic_0001>
module attributes {stable_mosaic.version = 11 : i64} {
  func.func @kernel(%arg0: memref<64x96xf32, #tpu.memory_space<vmem>>, %arg1: memref<4x32x64xbf16, #tpu.memory_space<vmem>>, %arg2: memref<4x96x128xbf16, #tpu.memory_space<vmem>>, %arg3: memref<128x8xf32, #tpu.memory_space<vmem>>, %arg4: memref<8x128xf32, #tpu.memory_space<vmem>>, %arg5: memref<1x8xf32, #tpu.memory_space<vmem>>, %arg6: memref<1x8xf32, #tpu.memory_space<vmem>>, %arg7: memref<4x16x32xbf16, #tpu.memory_space<vmem>>, %arg8: memref<4x128x128xbf16, #tpu.memory_space<vmem>>, %arg9: memref<128x16xf32, #tpu.memory_space<vmem>>, %arg10: memref<16x128xf32, #tpu.memory_space<vmem>>, %arg11: memref<1x16xf32, #tpu.memory_space<vmem>>, %arg12: memref<1x16xf32, #tpu.memory_space<vmem>>, %arg13: memref<3x8x16xbf16, #tpu.memory_space<vmem>>, %arg14: memref<3x128x128xbf16, #tpu.memory_space<vmem>>, %arg15: memref<128x32xf32, #tpu.memory_space<vmem>>, %arg16: memref<32x128xf32, #tpu.memory_space<vmem>>, %arg17: memref<1x32xf32, #tpu.memory_space<vmem>>, %arg18: memref<1x32xf32, #tpu.memory_space<vmem>>, %arg19: memref<4x2x8xbf16, #tpu.memory_space<vmem>>, %arg20: memref<4x128x1xbf16, #tpu.memory_space<vmem>>, %arg21: memref<1x1xf32, #tpu.memory_space<vmem>>, %arg22: memref<2x1xf32, #tpu.memory_space<vmem>>) attributes {dimension_semantics = [], scalar_prefetch = 0 : i64, scratch_operands = 0 : i64, tpu.core_type = #tpu.core_type<tc>} {
    %c0 = arith.constant 0 : index
    %c0_0 = arith.constant 0 : index
    %0 = vector.load %arg0[%c0, %c0_0] : memref<64x96xf32, #tpu.memory_space<vmem>>, vector<64x96xf32>
    %1 = arith.truncf %0 : vector<64x96xf32> to vector<64x96xbf16>
    %c0_1 = arith.constant 0 : index
    %c0_2 = arith.constant 0 : index
    %c0_3 = arith.constant 0 : index
    %2 = vector.load %arg1[%c0_1, %c0_2, %c0_3] : memref<4x32x64xbf16, #tpu.memory_space<vmem>>, vector<1x32x64xbf16>
    %3 = vector.shape_cast %2 : vector<1x32x64xbf16> to vector<32x64xbf16>
    %cst = arith.constant dense<0.000000e+00> : vector<32x96xf32>
    %4 = tpu.matmul %3, %1, %cst {dimension_numbers = #tpu.dot_dimension_numbers<[1], [0], [0], [1], [0, 0, 1, 1], [], []>} : vector<32x64xbf16>, vector<64x96xbf16>, vector<32x96xf32> -> vector<32x96xf32>
    %5 = arith.truncf %4 : vector<32x96xf32> to vector<32x96xbf16>
    %c0_4 = arith.constant 0 : index
    %c0_5 = arith.constant 0 : index
    %c0_6 = arith.constant 0 : index
    %6 = vector.load %arg2[%c0_4, %c0_5, %c0_6] : memref<4x96x128xbf16, #tpu.memory_space<vmem>>, vector<1x96x128xbf16>
    %7 = vector.shape_cast %6 : vector<1x96x128xbf16> to vector<96x128xbf16>
    %cst_7 = arith.constant dense<0.000000e+00> : vector<32x128xf32>
    %8 = tpu.matmul %5, %7, %cst_7 {dimension_numbers = #tpu.dot_dimension_numbers<[1], [0], [0], [1], [0, 0, 1, 1], [], []>} : vector<32x96xbf16>, vector<96x128xbf16>, vector<32x128xf32> -> vector<32x128xf32>
    %c1 = arith.constant 1 : index
    %c0_8 = arith.constant 0 : index
    %c0_9 = arith.constant 0 : index
    %9 = vector.load %arg1[%c1, %c0_8, %c0_9] : memref<4x32x64xbf16, #tpu.memory_space<vmem>>, vector<1x32x64xbf16>
    %10 = vector.shape_cast %9 : vector<1x32x64xbf16> to vector<32x64xbf16>
    %cst_10 = arith.constant dense<0.000000e+00> : vector<32x96xf32>
    %11 = tpu.matmul %10, %1, %cst_10 {dimension_numbers = #tpu.dot_dimension_numbers<[1], [0], [0], [1], [0, 0, 1, 1], [], []>} : vector<32x64xbf16>, vector<64x96xbf16>, vector<32x96xf32> -> vector<32x96xf32>
    %12 = arith.truncf %11 : vector<32x96xf32> to vector<32x96xbf16>
    %c1_11 = arith.constant 1 : index
    %c0_12 = arith.constant 0 : index
    %c0_13 = arith.constant 0 : index
    %13 = vector.load %arg2[%c1_11, %c0_12, %c0_13] : memref<4x96x128xbf16, #tpu.memory_space<vmem>>, vector<1x96x128xbf16>
    %14 = vector.shape_cast %13 : vector<1x96x128xbf16> to vector<96x128xbf16>
    %cst_14 = arith.constant dense<0.000000e+00> : vector<32x128xf32>
    %15 = tpu.matmul %12, %14, %cst_14 {dimension_numbers = #tpu.dot_dimension_numbers<[1], [0], [0], [1], [0, 0, 1, 1], [], []>} : vector<32x96xbf16>, vector<96x128xbf16>, vector<32x128xf32> -> vector<32x128xf32>
    %16 = arith.addf %8, %15 : vector<32x128xf32>
    %c2 = arith.constant 2 : index
    %c0_15 = arith.constant 0 : index
    %c0_16 = arith.constant 0 : index
    %17 = vector.load %arg1[%c2, %c0_15, %c0_16] : memref<4x32x64xbf16, #tpu.memory_space<vmem>>, vector<1x32x64xbf16>
    %18 = vector.shape_cast %17 : vector<1x32x64xbf16> to vector<32x64xbf16>
    %cst_17 = arith.constant dense<0.000000e+00> : vector<32x96xf32>
    %19 = tpu.matmul %18, %1, %cst_17 {dimension_numbers = #tpu.dot_dimension_numbers<[1], [0], [0], [1], [0, 0, 1, 1], [], []>} : vector<32x64xbf16>, vector<64x96xbf16>, vector<32x96xf32> -> vector<32x96xf32>
    %20 = arith.truncf %19 : vector<32x96xf32> to vector<32x96xbf16>
    %c2_18 = arith.constant 2 : index
    %c0_19 = arith.constant 0 : index
    %c0_20 = arith.constant 0 : index
    %21 = vector.load %arg2[%c2_18, %c0_19, %c0_20] : memref<4x96x128xbf16, #tpu.memory_space<vmem>>, vector<1x96x128xbf16>
    %22 = vector.shape_cast %21 : vector<1x96x128xbf16> to vector<96x128xbf16>
    %cst_21 = arith.constant dense<0.000000e+00> : vector<32x128xf32>
    %23 = tpu.matmul %20, %22, %cst_21 {dimension_numbers = #tpu.dot_dimension_numbers<[1], [0], [0], [1], [0, 0, 1, 1], [], []>} : vector<32x96xbf16>, vector<96x128xbf16>, vector<32x128xf32> -> vector<32x128xf32>
    %24 = arith.addf %16, %23 : vector<32x128xf32>
    %c3 = arith.constant 3 : index
    %c0_22 = arith.constant 0 : index
    %c0_23 = arith.constant 0 : index
    %25 = vector.load %arg1[%c3, %c0_22, %c0_23] : memref<4x32x64xbf16, #tpu.memory_space<vmem>>, vector<1x32x64xbf16>
    %26 = vector.shape_cast %25 : vector<1x32x64xbf16> to vector<32x64xbf16>
    %cst_24 = arith.constant dense<0.000000e+00> : vector<32x96xf32>
    %27 = tpu.matmul %26, %1, %cst_24 {dimension_numbers = #tpu.dot_dimension_numbers<[1], [0], [0], [1], [0, 0, 1, 1], [], []>} : vector<32x64xbf16>, vector<64x96xbf16>, vector<32x96xf32> -> vector<32x96xf32>
    %28 = arith.truncf %27 : vector<32x96xf32> to vector<32x96xbf16>
    %c3_25 = arith.constant 3 : index
    %c0_26 = arith.constant 0 : index
    %c0_27 = arith.constant 0 : index
    %29 = vector.load %arg2[%c3_25, %c0_26, %c0_27] : memref<4x96x128xbf16, #tpu.memory_space<vmem>>, vector<1x96x128xbf16>
    %30 = vector.shape_cast %29 : vector<1x96x128xbf16> to vector<96x128xbf16>
    %cst_28 = arith.constant dense<0.000000e+00> : vector<32x128xf32>
    %31 = tpu.matmul %28, %30, %cst_28 {dimension_numbers = #tpu.dot_dimension_numbers<[1], [0], [0], [1], [0, 0, 1, 1], [], []>} : vector<32x96xbf16>, vector<96x128xbf16>, vector<32x128xf32> -> vector<32x128xf32>
    %32 = arith.addf %24, %31 : vector<32x128xf32>
    %cst_29 = arith.constant dense<0.000000e+00> : vector<128xf32>
    %33 = vector.multi_reduction <add>, %32, %cst_29 [0] : vector<32x128xf32> to vector<128xf32>
    %34 = vector.shape_cast %33 : vector<128xf32> to vector<1x128xf32>
    %35 = arith.mulf %32, %32 : vector<32x128xf32>
    %cst_30 = arith.constant dense<0.000000e+00> : vector<128xf32>
    %36 = vector.multi_reduction <add>, %35, %cst_30 [0] : vector<32x128xf32> to vector<128xf32>
    %37 = vector.shape_cast %36 : vector<128xf32> to vector<1x128xf32>
    %c0_31 = arith.constant 0 : index
    %c0_32 = arith.constant 0 : index
    %38 = vector.load %arg3[%c0_31, %c0_32] : memref<128x8xf32, #tpu.memory_space<vmem>>, vector<128x8xf32>
    %cst_33 = arith.constant dense<0.000000e+00> : vector<1x8xf32>
    %39 = tpu.matmul %34, %38, %cst_33 {dimension_numbers = #tpu.dot_dimension_numbers<[1], [0], [0], [1], [0, 0, 1, 1], [], []>} : vector<1x128xf32>, vector<128x8xf32>, vector<1x8xf32> -> vector<1x8xf32>
    %cst_34 = arith.constant 0.001953125 : f32
    %40 = vector.broadcast %cst_34 : f32 to vector<1x8xf32>
    %41 = arith.mulf %39, %40 : vector<1x8xf32>
    %c0_35 = arith.constant 0 : index
    %c0_36 = arith.constant 0 : index
    %42 = vector.load %arg3[%c0_35, %c0_36] : memref<128x8xf32, #tpu.memory_space<vmem>>, vector<128x8xf32>
    %cst_37 = arith.constant dense<0.000000e+00> : vector<1x8xf32>
    %43 = tpu.matmul %37, %42, %cst_37 {dimension_numbers = #tpu.dot_dimension_numbers<[1], [0], [0], [1], [0, 0, 1, 1], [], []>} : vector<1x128xf32>, vector<128x8xf32>, vector<1x8xf32> -> vector<1x8xf32>
    %cst_38 = arith.constant 0.001953125 : f32
    %44 = vector.broadcast %cst_38 : f32 to vector<1x8xf32>
    %45 = arith.mulf %43, %44 : vector<1x8xf32>
    %46 = arith.mulf %41, %41 : vector<1x8xf32>
    %47 = arith.subf %45, %46 : vector<1x8xf32>
    %cst_39 = arith.constant 0.000000e+00 : f32
    %48 = vector.broadcast %cst_39 : f32 to vector<1x8xf32>
    %49 = arith.maximumf %47, %48 : vector<1x8xf32>
    %c0_40 = arith.constant 0 : index
    %c0_41 = arith.constant 0 : index
    %50 = vector.load %arg5[%c0_40, %c0_41] : memref<1x8xf32, #tpu.memory_space<vmem>>, vector<1x8xf32>
    %cst_42 = arith.constant 9.99999974E-6 : f32
    %51 = vector.broadcast %cst_42 : f32 to vector<1x8xf32>
    %52 = arith.addf %49, %51 : vector<1x8xf32>
    %53 = math.rsqrt %52 : vector<1x8xf32>
    %54 = arith.mulf %50, %53 : vector<1x8xf32>
    %c0_43 = arith.constant 0 : index
    %c0_44 = arith.constant 0 : index
    %55 = vector.load %arg6[%c0_43, %c0_44] : memref<1x8xf32, #tpu.memory_space<vmem>>, vector<1x8xf32>
    %56 = arith.mulf %41, %54 : vector<1x8xf32>
    %57 = arith.subf %55, %56 : vector<1x8xf32>
    %c0_45 = arith.constant 0 : index
    %c0_46 = arith.constant 0 : index
    %58 = vector.load %arg4[%c0_45, %c0_46] : memref<8x128xf32, #tpu.memory_space<vmem>>, vector<8x128xf32>
    %cst_47 = arith.constant dense<0.000000e+00> : vector<1x128xf32>
    %59 = tpu.matmul %54, %58, %cst_47 {dimension_numbers = #tpu.dot_dimension_numbers<[1], [0], [0], [1], [0, 0, 1, 1], [], []>} : vector<1x8xf32>, vector<8x128xf32>, vector<1x128xf32> -> vector<1x128xf32>
    %c0_48 = arith.constant 0 : index
    %c0_49 = arith.constant 0 : index
    %60 = vector.load %arg4[%c0_48, %c0_49] : memref<8x128xf32, #tpu.memory_space<vmem>>, vector<8x128xf32>
    %cst_50 = arith.constant dense<0.000000e+00> : vector<1x128xf32>
    %61 = tpu.matmul %57, %60, %cst_50 {dimension_numbers = #tpu.dot_dimension_numbers<[1], [0], [0], [1], [0, 0, 1, 1], [], []>} : vector<1x8xf32>, vector<8x128xf32>, vector<1x128xf32> -> vector<1x128xf32>
    %62 = vector.broadcast %59 : vector<1x128xf32> to vector<32x128xf32>
    %63 = arith.mulf %32, %62 : vector<32x128xf32>
    %64 = vector.broadcast %61 : vector<1x128xf32> to vector<32x128xf32>
    %65 = arith.addf %63, %64 : vector<32x128xf32>
    %cst_51 = arith.constant 0.000000e+00 : f32
    %66 = vector.broadcast %cst_51 : f32 to vector<32x128xf32>
    %67 = arith.cmpf oge, %65, %66 : vector<32x128xf32>
    %cst_52 = arith.constant 2.000000e-01 : f32
    %68 = vector.broadcast %cst_52 : f32 to vector<32x128xf32>
    %69 = arith.mulf %68, %65 : vector<32x128xf32>
    %70 = arith.select %67, %65, %69 : vector<32x128xi1>, vector<32x128xf32>
    %71 = arith.truncf %70 : vector<32x128xf32> to vector<32x128xbf16>
    %c0_53 = arith.constant 0 : index
    %c0_54 = arith.constant 0 : index
    %c0_55 = arith.constant 0 : index
    %72 = vector.load %arg7[%c0_53, %c0_54, %c0_55] : memref<4x16x32xbf16, #tpu.memory_space<vmem>>, vector<1x16x32xbf16>
    %73 = vector.shape_cast %72 : vector<1x16x32xbf16> to vector<16x32xbf16>
    %cst_56 = arith.constant dense<0.000000e+00> : vector<16x128xf32>
    %74 = tpu.matmul %73, %71, %cst_56 {dimension_numbers = #tpu.dot_dimension_numbers<[1], [0], [0], [1], [0, 0, 1, 1], [], []>} : vector<16x32xbf16>, vector<32x128xbf16>, vector<16x128xf32> -> vector<16x128xf32>
    %75 = arith.truncf %74 : vector<16x128xf32> to vector<16x128xbf16>
    %c0_57 = arith.constant 0 : index
    %c0_58 = arith.constant 0 : index
    %c0_59 = arith.constant 0 : index
    %76 = vector.load %arg8[%c0_57, %c0_58, %c0_59] : memref<4x128x128xbf16, #tpu.memory_space<vmem>>, vector<1x128x128xbf16>
    %77 = vector.shape_cast %76 : vector<1x128x128xbf16> to vector<128x128xbf16>
    %cst_60 = arith.constant dense<0.000000e+00> : vector<16x128xf32>
    %78 = tpu.matmul %75, %77, %cst_60 {dimension_numbers = #tpu.dot_dimension_numbers<[1], [0], [0], [1], [0, 0, 1, 1], [], []>} : vector<16x128xbf16>, vector<128x128xbf16>, vector<16x128xf32> -> vector<16x128xf32>
    %c1_61 = arith.constant 1 : index
    %c0_62 = arith.constant 0 : index
    %c0_63 = arith.constant 0 : index
    %79 = vector.load %arg7[%c1_61, %c0_62, %c0_63] : memref<4x16x32xbf16, #tpu.memory_space<vmem>>, vector<1x16x32xbf16>
    %80 = vector.shape_cast %79 : vector<1x16x32xbf16> to vector<16x32xbf16>
    %cst_64 = arith.constant dense<0.000000e+00> : vector<16x128xf32>
    %81 = tpu.matmul %80, %71, %cst_64 {dimension_numbers = #tpu.dot_dimension_numbers<[1], [0], [0], [1], [0, 0, 1, 1], [], []>} : vector<16x32xbf16>, vector<32x128xbf16>, vector<16x128xf32> -> vector<16x128xf32>
    %82 = arith.truncf %81 : vector<16x128xf32> to vector<16x128xbf16>
    %c1_65 = arith.constant 1 : index
    %c0_66 = arith.constant 0 : index
    %c0_67 = arith.constant 0 : index
    %83 = vector.load %arg8[%c1_65, %c0_66, %c0_67] : memref<4x128x128xbf16, #tpu.memory_space<vmem>>, vector<1x128x128xbf16>
    %84 = vector.shape_cast %83 : vector<1x128x128xbf16> to vector<128x128xbf16>
    %cst_68 = arith.constant dense<0.000000e+00> : vector<16x128xf32>
    %85 = tpu.matmul %82, %84, %cst_68 {dimension_numbers = #tpu.dot_dimension_numbers<[1], [0], [0], [1], [0, 0, 1, 1], [], []>} : vector<16x128xbf16>, vector<128x128xbf16>, vector<16x128xf32> -> vector<16x128xf32>
    %86 = arith.addf %78, %85 : vector<16x128xf32>
    %c2_69 = arith.constant 2 : index
    %c0_70 = arith.constant 0 : index
    %c0_71 = arith.constant 0 : index
    %87 = vector.load %arg7[%c2_69, %c0_70, %c0_71] : memref<4x16x32xbf16, #tpu.memory_space<vmem>>, vector<1x16x32xbf16>
    %88 = vector.shape_cast %87 : vector<1x16x32xbf16> to vector<16x32xbf16>
    %cst_72 = arith.constant dense<0.000000e+00> : vector<16x128xf32>
    %89 = tpu.matmul %88, %71, %cst_72 {dimension_numbers = #tpu.dot_dimension_numbers<[1], [0], [0], [1], [0, 0, 1, 1], [], []>} : vector<16x32xbf16>, vector<32x128xbf16>, vector<16x128xf32> -> vector<16x128xf32>
    %90 = arith.truncf %89 : vector<16x128xf32> to vector<16x128xbf16>
    %c2_73 = arith.constant 2 : index
    %c0_74 = arith.constant 0 : index
    %c0_75 = arith.constant 0 : index
    %91 = vector.load %arg8[%c2_73, %c0_74, %c0_75] : memref<4x128x128xbf16, #tpu.memory_space<vmem>>, vector<1x128x128xbf16>
    %92 = vector.shape_cast %91 : vector<1x128x128xbf16> to vector<128x128xbf16>
    %cst_76 = arith.constant dense<0.000000e+00> : vector<16x128xf32>
    %93 = tpu.matmul %90, %92, %cst_76 {dimension_numbers = #tpu.dot_dimension_numbers<[1], [0], [0], [1], [0, 0, 1, 1], [], []>} : vector<16x128xbf16>, vector<128x128xbf16>, vector<16x128xf32> -> vector<16x128xf32>
    %94 = arith.addf %86, %93 : vector<16x128xf32>
    %c3_77 = arith.constant 3 : index
    %c0_78 = arith.constant 0 : index
    %c0_79 = arith.constant 0 : index
    %95 = vector.load %arg7[%c3_77, %c0_78, %c0_79] : memref<4x16x32xbf16, #tpu.memory_space<vmem>>, vector<1x16x32xbf16>
    %96 = vector.shape_cast %95 : vector<1x16x32xbf16> to vector<16x32xbf16>
    %cst_80 = arith.constant dense<0.000000e+00> : vector<16x128xf32>
    %97 = tpu.matmul %96, %71, %cst_80 {dimension_numbers = #tpu.dot_dimension_numbers<[1], [0], [0], [1], [0, 0, 1, 1], [], []>} : vector<16x32xbf16>, vector<32x128xbf16>, vector<16x128xf32> -> vector<16x128xf32>
    %98 = arith.truncf %97 : vector<16x128xf32> to vector<16x128xbf16>
    %c3_81 = arith.constant 3 : index
    %c0_82 = arith.constant 0 : index
    %c0_83 = arith.constant 0 : index
    %99 = vector.load %arg8[%c3_81, %c0_82, %c0_83] : memref<4x128x128xbf16, #tpu.memory_space<vmem>>, vector<1x128x128xbf16>
    %100 = vector.shape_cast %99 : vector<1x128x128xbf16> to vector<128x128xbf16>
    %cst_84 = arith.constant dense<0.000000e+00> : vector<16x128xf32>
    %101 = tpu.matmul %98, %100, %cst_84 {dimension_numbers = #tpu.dot_dimension_numbers<[1], [0], [0], [1], [0, 0, 1, 1], [], []>} : vector<16x128xbf16>, vector<128x128xbf16>, vector<16x128xf32> -> vector<16x128xf32>
    %102 = arith.addf %94, %101 : vector<16x128xf32>
    %cst_85 = arith.constant dense<0.000000e+00> : vector<128xf32>
    %103 = vector.multi_reduction <add>, %102, %cst_85 [0] : vector<16x128xf32> to vector<128xf32>
    %104 = vector.shape_cast %103 : vector<128xf32> to vector<1x128xf32>
    %105 = arith.mulf %102, %102 : vector<16x128xf32>
    %cst_86 = arith.constant dense<0.000000e+00> : vector<128xf32>
    %106 = vector.multi_reduction <add>, %105, %cst_86 [0] : vector<16x128xf32> to vector<128xf32>
    %107 = vector.shape_cast %106 : vector<128xf32> to vector<1x128xf32>
    %c0_87 = arith.constant 0 : index
    %c0_88 = arith.constant 0 : index
    %108 = vector.load %arg9[%c0_87, %c0_88] : memref<128x16xf32, #tpu.memory_space<vmem>>, vector<128x16xf32>
    %cst_89 = arith.constant dense<0.000000e+00> : vector<1x16xf32>
    %109 = tpu.matmul %104, %108, %cst_89 {dimension_numbers = #tpu.dot_dimension_numbers<[1], [0], [0], [1], [0, 0, 1, 1], [], []>} : vector<1x128xf32>, vector<128x16xf32>, vector<1x16xf32> -> vector<1x16xf32>
    %cst_90 = arith.constant 7.812500e-03 : f32
    %110 = vector.broadcast %cst_90 : f32 to vector<1x16xf32>
    %111 = arith.mulf %109, %110 : vector<1x16xf32>
    %c0_91 = arith.constant 0 : index
    %c0_92 = arith.constant 0 : index
    %112 = vector.load %arg9[%c0_91, %c0_92] : memref<128x16xf32, #tpu.memory_space<vmem>>, vector<128x16xf32>
    %cst_93 = arith.constant dense<0.000000e+00> : vector<1x16xf32>
    %113 = tpu.matmul %107, %112, %cst_93 {dimension_numbers = #tpu.dot_dimension_numbers<[1], [0], [0], [1], [0, 0, 1, 1], [], []>} : vector<1x128xf32>, vector<128x16xf32>, vector<1x16xf32> -> vector<1x16xf32>
    %cst_94 = arith.constant 7.812500e-03 : f32
    %114 = vector.broadcast %cst_94 : f32 to vector<1x16xf32>
    %115 = arith.mulf %113, %114 : vector<1x16xf32>
    %116 = arith.mulf %111, %111 : vector<1x16xf32>
    %117 = arith.subf %115, %116 : vector<1x16xf32>
    %cst_95 = arith.constant 0.000000e+00 : f32
    %118 = vector.broadcast %cst_95 : f32 to vector<1x16xf32>
    %119 = arith.maximumf %117, %118 : vector<1x16xf32>
    %c0_96 = arith.constant 0 : index
    %c0_97 = arith.constant 0 : index
    %120 = vector.load %arg11[%c0_96, %c0_97] : memref<1x16xf32, #tpu.memory_space<vmem>>, vector<1x16xf32>
    %cst_98 = arith.constant 9.99999974E-6 : f32
    %121 = vector.broadcast %cst_98 : f32 to vector<1x16xf32>
    %122 = arith.addf %119, %121 : vector<1x16xf32>
    %123 = math.rsqrt %122 : vector<1x16xf32>
    %124 = arith.mulf %120, %123 : vector<1x16xf32>
    %c0_99 = arith.constant 0 : index
    %c0_100 = arith.constant 0 : index
    %125 = vector.load %arg12[%c0_99, %c0_100] : memref<1x16xf32, #tpu.memory_space<vmem>>, vector<1x16xf32>
    %126 = arith.mulf %111, %124 : vector<1x16xf32>
    %127 = arith.subf %125, %126 : vector<1x16xf32>
    %c0_101 = arith.constant 0 : index
    %c0_102 = arith.constant 0 : index
    %128 = vector.load %arg10[%c0_101, %c0_102] : memref<16x128xf32, #tpu.memory_space<vmem>>, vector<16x128xf32>
    %cst_103 = arith.constant dense<0.000000e+00> : vector<1x128xf32>
    %129 = tpu.matmul %124, %128, %cst_103 {dimension_numbers = #tpu.dot_dimension_numbers<[1], [0], [0], [1], [0, 0, 1, 1], [], []>} : vector<1x16xf32>, vector<16x128xf32>, vector<1x128xf32> -> vector<1x128xf32>
    %c0_104 = arith.constant 0 : index
    %c0_105 = arith.constant 0 : index
    %130 = vector.load %arg10[%c0_104, %c0_105] : memref<16x128xf32, #tpu.memory_space<vmem>>, vector<16x128xf32>
    %cst_106 = arith.constant dense<0.000000e+00> : vector<1x128xf32>
    %131 = tpu.matmul %127, %130, %cst_106 {dimension_numbers = #tpu.dot_dimension_numbers<[1], [0], [0], [1], [0, 0, 1, 1], [], []>} : vector<1x16xf32>, vector<16x128xf32>, vector<1x128xf32> -> vector<1x128xf32>
    %132 = vector.broadcast %129 : vector<1x128xf32> to vector<16x128xf32>
    %133 = arith.mulf %102, %132 : vector<16x128xf32>
    %134 = vector.broadcast %131 : vector<1x128xf32> to vector<16x128xf32>
    %135 = arith.addf %133, %134 : vector<16x128xf32>
    %cst_107 = arith.constant 0.000000e+00 : f32
    %136 = vector.broadcast %cst_107 : f32 to vector<16x128xf32>
    %137 = arith.cmpf oge, %135, %136 : vector<16x128xf32>
    %cst_108 = arith.constant 2.000000e-01 : f32
    %138 = vector.broadcast %cst_108 : f32 to vector<16x128xf32>
    %139 = arith.mulf %138, %135 : vector<16x128xf32>
    %140 = arith.select %137, %135, %139 : vector<16x128xi1>, vector<16x128xf32>
    %141 = arith.truncf %140 : vector<16x128xf32> to vector<16x128xbf16>
    %c0_109 = arith.constant 0 : index
    %c0_110 = arith.constant 0 : index
    %c0_111 = arith.constant 0 : index
    %142 = vector.load %arg13[%c0_109, %c0_110, %c0_111] : memref<3x8x16xbf16, #tpu.memory_space<vmem>>, vector<1x8x16xbf16>
    %143 = vector.shape_cast %142 : vector<1x8x16xbf16> to vector<8x16xbf16>
    %cst_112 = arith.constant dense<0.000000e+00> : vector<8x128xf32>
    %144 = tpu.matmul %143, %141, %cst_112 {dimension_numbers = #tpu.dot_dimension_numbers<[1], [0], [0], [1], [0, 0, 1, 1], [], []>} : vector<8x16xbf16>, vector<16x128xbf16>, vector<8x128xf32> -> vector<8x128xf32>
    %145 = arith.truncf %144 : vector<8x128xf32> to vector<8x128xbf16>
    %c0_113 = arith.constant 0 : index
    %c0_114 = arith.constant 0 : index
    %c0_115 = arith.constant 0 : index
    %146 = vector.load %arg14[%c0_113, %c0_114, %c0_115] : memref<3x128x128xbf16, #tpu.memory_space<vmem>>, vector<1x128x128xbf16>
    %147 = vector.shape_cast %146 : vector<1x128x128xbf16> to vector<128x128xbf16>
    %cst_116 = arith.constant dense<0.000000e+00> : vector<8x128xf32>
    %148 = tpu.matmul %145, %147, %cst_116 {dimension_numbers = #tpu.dot_dimension_numbers<[1], [0], [0], [1], [0, 0, 1, 1], [], []>} : vector<8x128xbf16>, vector<128x128xbf16>, vector<8x128xf32> -> vector<8x128xf32>
    %c1_117 = arith.constant 1 : index
    %c0_118 = arith.constant 0 : index
    %c0_119 = arith.constant 0 : index
    %149 = vector.load %arg13[%c1_117, %c0_118, %c0_119] : memref<3x8x16xbf16, #tpu.memory_space<vmem>>, vector<1x8x16xbf16>
    %150 = vector.shape_cast %149 : vector<1x8x16xbf16> to vector<8x16xbf16>
    %cst_120 = arith.constant dense<0.000000e+00> : vector<8x128xf32>
    %151 = tpu.matmul %150, %141, %cst_120 {dimension_numbers = #tpu.dot_dimension_numbers<[1], [0], [0], [1], [0, 0, 1, 1], [], []>} : vector<8x16xbf16>, vector<16x128xbf16>, vector<8x128xf32> -> vector<8x128xf32>
    %152 = arith.truncf %151 : vector<8x128xf32> to vector<8x128xbf16>
    %c1_121 = arith.constant 1 : index
    %c0_122 = arith.constant 0 : index
    %c0_123 = arith.constant 0 : index
    %153 = vector.load %arg14[%c1_121, %c0_122, %c0_123] : memref<3x128x128xbf16, #tpu.memory_space<vmem>>, vector<1x128x128xbf16>
    %154 = vector.shape_cast %153 : vector<1x128x128xbf16> to vector<128x128xbf16>
    %cst_124 = arith.constant dense<0.000000e+00> : vector<8x128xf32>
    %155 = tpu.matmul %152, %154, %cst_124 {dimension_numbers = #tpu.dot_dimension_numbers<[1], [0], [0], [1], [0, 0, 1, 1], [], []>} : vector<8x128xbf16>, vector<128x128xbf16>, vector<8x128xf32> -> vector<8x128xf32>
    %156 = arith.addf %148, %155 : vector<8x128xf32>
    %c2_125 = arith.constant 2 : index
    %c0_126 = arith.constant 0 : index
    %c0_127 = arith.constant 0 : index
    %157 = vector.load %arg13[%c2_125, %c0_126, %c0_127] : memref<3x8x16xbf16, #tpu.memory_space<vmem>>, vector<1x8x16xbf16>
    %158 = vector.shape_cast %157 : vector<1x8x16xbf16> to vector<8x16xbf16>
    %cst_128 = arith.constant dense<0.000000e+00> : vector<8x128xf32>
    %159 = tpu.matmul %158, %141, %cst_128 {dimension_numbers = #tpu.dot_dimension_numbers<[1], [0], [0], [1], [0, 0, 1, 1], [], []>} : vector<8x16xbf16>, vector<16x128xbf16>, vector<8x128xf32> -> vector<8x128xf32>
    %160 = arith.truncf %159 : vector<8x128xf32> to vector<8x128xbf16>
    %c2_129 = arith.constant 2 : index
    %c0_130 = arith.constant 0 : index
    %c0_131 = arith.constant 0 : index
    %161 = vector.load %arg14[%c2_129, %c0_130, %c0_131] : memref<3x128x128xbf16, #tpu.memory_space<vmem>>, vector<1x128x128xbf16>
    %162 = vector.shape_cast %161 : vector<1x128x128xbf16> to vector<128x128xbf16>
    %cst_132 = arith.constant dense<0.000000e+00> : vector<8x128xf32>
    %163 = tpu.matmul %160, %162, %cst_132 {dimension_numbers = #tpu.dot_dimension_numbers<[1], [0], [0], [1], [0, 0, 1, 1], [], []>} : vector<8x128xbf16>, vector<128x128xbf16>, vector<8x128xf32> -> vector<8x128xf32>
    %164 = arith.addf %156, %163 : vector<8x128xf32>
    %cst_133 = arith.constant dense<0.000000e+00> : vector<128xf32>
    %165 = vector.multi_reduction <add>, %164, %cst_133 [0] : vector<8x128xf32> to vector<128xf32>
    %166 = vector.shape_cast %165 : vector<128xf32> to vector<1x128xf32>
    %167 = arith.mulf %164, %164 : vector<8x128xf32>
    %cst_134 = arith.constant dense<0.000000e+00> : vector<128xf32>
    %168 = vector.multi_reduction <add>, %167, %cst_134 [0] : vector<8x128xf32> to vector<128xf32>
    %169 = vector.shape_cast %168 : vector<128xf32> to vector<1x128xf32>
    %c0_135 = arith.constant 0 : index
    %c0_136 = arith.constant 0 : index
    %170 = vector.load %arg15[%c0_135, %c0_136] : memref<128x32xf32, #tpu.memory_space<vmem>>, vector<128x32xf32>
    %cst_137 = arith.constant dense<0.000000e+00> : vector<1x32xf32>
    %171 = tpu.matmul %166, %170, %cst_137 {dimension_numbers = #tpu.dot_dimension_numbers<[1], [0], [0], [1], [0, 0, 1, 1], [], []>} : vector<1x128xf32>, vector<128x32xf32>, vector<1x32xf32> -> vector<1x32xf32>
    %cst_138 = arith.constant 3.125000e-02 : f32
    %172 = vector.broadcast %cst_138 : f32 to vector<1x32xf32>
    %173 = arith.mulf %171, %172 : vector<1x32xf32>
    %c0_139 = arith.constant 0 : index
    %c0_140 = arith.constant 0 : index
    %174 = vector.load %arg15[%c0_139, %c0_140] : memref<128x32xf32, #tpu.memory_space<vmem>>, vector<128x32xf32>
    %cst_141 = arith.constant dense<0.000000e+00> : vector<1x32xf32>
    %175 = tpu.matmul %169, %174, %cst_141 {dimension_numbers = #tpu.dot_dimension_numbers<[1], [0], [0], [1], [0, 0, 1, 1], [], []>} : vector<1x128xf32>, vector<128x32xf32>, vector<1x32xf32> -> vector<1x32xf32>
    %cst_142 = arith.constant 3.125000e-02 : f32
    %176 = vector.broadcast %cst_142 : f32 to vector<1x32xf32>
    %177 = arith.mulf %175, %176 : vector<1x32xf32>
    %178 = arith.mulf %173, %173 : vector<1x32xf32>
    %179 = arith.subf %177, %178 : vector<1x32xf32>
    %cst_143 = arith.constant 0.000000e+00 : f32
    %180 = vector.broadcast %cst_143 : f32 to vector<1x32xf32>
    %181 = arith.maximumf %179, %180 : vector<1x32xf32>
    %c0_144 = arith.constant 0 : index
    %c0_145 = arith.constant 0 : index
    %182 = vector.load %arg17[%c0_144, %c0_145] : memref<1x32xf32, #tpu.memory_space<vmem>>, vector<1x32xf32>
    %cst_146 = arith.constant 9.99999974E-6 : f32
    %183 = vector.broadcast %cst_146 : f32 to vector<1x32xf32>
    %184 = arith.addf %181, %183 : vector<1x32xf32>
    %185 = math.rsqrt %184 : vector<1x32xf32>
    %186 = arith.mulf %182, %185 : vector<1x32xf32>
    %c0_147 = arith.constant 0 : index
    %c0_148 = arith.constant 0 : index
    %187 = vector.load %arg18[%c0_147, %c0_148] : memref<1x32xf32, #tpu.memory_space<vmem>>, vector<1x32xf32>
    %188 = arith.mulf %173, %186 : vector<1x32xf32>
    %189 = arith.subf %187, %188 : vector<1x32xf32>
    %c0_149 = arith.constant 0 : index
    %c0_150 = arith.constant 0 : index
    %190 = vector.load %arg16[%c0_149, %c0_150] : memref<32x128xf32, #tpu.memory_space<vmem>>, vector<32x128xf32>
    %cst_151 = arith.constant dense<0.000000e+00> : vector<1x128xf32>
    %191 = tpu.matmul %186, %190, %cst_151 {dimension_numbers = #tpu.dot_dimension_numbers<[1], [0], [0], [1], [0, 0, 1, 1], [], []>} : vector<1x32xf32>, vector<32x128xf32>, vector<1x128xf32> -> vector<1x128xf32>
    %c0_152 = arith.constant 0 : index
    %c0_153 = arith.constant 0 : index
    %192 = vector.load %arg16[%c0_152, %c0_153] : memref<32x128xf32, #tpu.memory_space<vmem>>, vector<32x128xf32>
    %cst_154 = arith.constant dense<0.000000e+00> : vector<1x128xf32>
    %193 = tpu.matmul %189, %192, %cst_154 {dimension_numbers = #tpu.dot_dimension_numbers<[1], [0], [0], [1], [0, 0, 1, 1], [], []>} : vector<1x32xf32>, vector<32x128xf32>, vector<1x128xf32> -> vector<1x128xf32>
    %194 = vector.broadcast %191 : vector<1x128xf32> to vector<8x128xf32>
    %195 = arith.mulf %164, %194 : vector<8x128xf32>
    %196 = vector.broadcast %193 : vector<1x128xf32> to vector<8x128xf32>
    %197 = arith.addf %195, %196 : vector<8x128xf32>
    %cst_155 = arith.constant 0.000000e+00 : f32
    %198 = vector.broadcast %cst_155 : f32 to vector<8x128xf32>
    %199 = arith.cmpf oge, %197, %198 : vector<8x128xf32>
    %cst_156 = arith.constant 2.000000e-01 : f32
    %200 = vector.broadcast %cst_156 : f32 to vector<8x128xf32>
    %201 = arith.mulf %200, %197 : vector<8x128xf32>
    %202 = arith.select %199, %197, %201 : vector<8x128xi1>, vector<8x128xf32>
    %203 = arith.truncf %202 : vector<8x128xf32> to vector<8x128xbf16>
    %c0_157 = arith.constant 0 : index
    %c0_158 = arith.constant 0 : index
    %c0_159 = arith.constant 0 : index
    %204 = vector.load %arg19[%c0_157, %c0_158, %c0_159] : memref<4x2x8xbf16, #tpu.memory_space<vmem>>, vector<1x2x8xbf16>
    %205 = vector.shape_cast %204 : vector<1x2x8xbf16> to vector<2x8xbf16>
    %cst_160 = arith.constant dense<0.000000e+00> : vector<2x128xf32>
    %206 = tpu.matmul %205, %203, %cst_160 {dimension_numbers = #tpu.dot_dimension_numbers<[1], [0], [0], [1], [0, 0, 1, 1], [], []>} : vector<2x8xbf16>, vector<8x128xbf16>, vector<2x128xf32> -> vector<2x128xf32>
    %207 = arith.truncf %206 : vector<2x128xf32> to vector<2x128xbf16>
    %c0_161 = arith.constant 0 : index
    %c0_162 = arith.constant 0 : index
    %c0_163 = arith.constant 0 : index
    %208 = vector.load %arg20[%c0_161, %c0_162, %c0_163] : memref<4x128x1xbf16, #tpu.memory_space<vmem>>, vector<1x128x1xbf16>
    %209 = vector.shape_cast %208 : vector<1x128x1xbf16> to vector<128x1xbf16>
    %cst_164 = arith.constant dense<0.000000e+00> : vector<2x1xf32>
    %210 = tpu.matmul %207, %209, %cst_164 {dimension_numbers = #tpu.dot_dimension_numbers<[1], [0], [0], [1], [0, 0, 1, 1], [], []>} : vector<2x128xbf16>, vector<128x1xbf16>, vector<2x1xf32> -> vector<2x1xf32>
    %c1_165 = arith.constant 1 : index
    %c0_166 = arith.constant 0 : index
    %c0_167 = arith.constant 0 : index
    %211 = vector.load %arg19[%c1_165, %c0_166, %c0_167] : memref<4x2x8xbf16, #tpu.memory_space<vmem>>, vector<1x2x8xbf16>
    %212 = vector.shape_cast %211 : vector<1x2x8xbf16> to vector<2x8xbf16>
    %cst_168 = arith.constant dense<0.000000e+00> : vector<2x128xf32>
    %213 = tpu.matmul %212, %203, %cst_168 {dimension_numbers = #tpu.dot_dimension_numbers<[1], [0], [0], [1], [0, 0, 1, 1], [], []>} : vector<2x8xbf16>, vector<8x128xbf16>, vector<2x128xf32> -> vector<2x128xf32>
    %214 = arith.truncf %213 : vector<2x128xf32> to vector<2x128xbf16>
    %c1_169 = arith.constant 1 : index
    %c0_170 = arith.constant 0 : index
    %c0_171 = arith.constant 0 : index
    %215 = vector.load %arg20[%c1_169, %c0_170, %c0_171] : memref<4x128x1xbf16, #tpu.memory_space<vmem>>, vector<1x128x1xbf16>
    %216 = vector.shape_cast %215 : vector<1x128x1xbf16> to vector<128x1xbf16>
    %cst_172 = arith.constant dense<0.000000e+00> : vector<2x1xf32>
    %217 = tpu.matmul %214, %216, %cst_172 {dimension_numbers = #tpu.dot_dimension_numbers<[1], [0], [0], [1], [0, 0, 1, 1], [], []>} : vector<2x128xbf16>, vector<128x1xbf16>, vector<2x1xf32> -> vector<2x1xf32>
    %218 = arith.addf %210, %217 : vector<2x1xf32>
    %c2_173 = arith.constant 2 : index
    %c0_174 = arith.constant 0 : index
    %c0_175 = arith.constant 0 : index
    %219 = vector.load %arg19[%c2_173, %c0_174, %c0_175] : memref<4x2x8xbf16, #tpu.memory_space<vmem>>, vector<1x2x8xbf16>
    %220 = vector.shape_cast %219 : vector<1x2x8xbf16> to vector<2x8xbf16>
    %cst_176 = arith.constant dense<0.000000e+00> : vector<2x128xf32>
    %221 = tpu.matmul %220, %203, %cst_176 {dimension_numbers = #tpu.dot_dimension_numbers<[1], [0], [0], [1], [0, 0, 1, 1], [], []>} : vector<2x8xbf16>, vector<8x128xbf16>, vector<2x128xf32> -> vector<2x128xf32>
    %222 = arith.truncf %221 : vector<2x128xf32> to vector<2x128xbf16>
    %c2_177 = arith.constant 2 : index
    %c0_178 = arith.constant 0 : index
    %c0_179 = arith.constant 0 : index
    %223 = vector.load %arg20[%c2_177, %c0_178, %c0_179] : memref<4x128x1xbf16, #tpu.memory_space<vmem>>, vector<1x128x1xbf16>
    %224 = vector.shape_cast %223 : vector<1x128x1xbf16> to vector<128x1xbf16>
    %cst_180 = arith.constant dense<0.000000e+00> : vector<2x1xf32>
    %225 = tpu.matmul %222, %224, %cst_180 {dimension_numbers = #tpu.dot_dimension_numbers<[1], [0], [0], [1], [0, 0, 1, 1], [], []>} : vector<2x128xbf16>, vector<128x1xbf16>, vector<2x1xf32> -> vector<2x1xf32>
    %226 = arith.addf %218, %225 : vector<2x1xf32>
    %c3_181 = arith.constant 3 : index
    %c0_182 = arith.constant 0 : index
    %c0_183 = arith.constant 0 : index
    %227 = vector.load %arg19[%c3_181, %c0_182, %c0_183] : memref<4x2x8xbf16, #tpu.memory_space<vmem>>, vector<1x2x8xbf16>
    %228 = vector.shape_cast %227 : vector<1x2x8xbf16> to vector<2x8xbf16>
    %cst_184 = arith.constant dense<0.000000e+00> : vector<2x128xf32>
    %229 = tpu.matmul %228, %203, %cst_184 {dimension_numbers = #tpu.dot_dimension_numbers<[1], [0], [0], [1], [0, 0, 1, 1], [], []>} : vector<2x8xbf16>, vector<8x128xbf16>, vector<2x128xf32> -> vector<2x128xf32>
    %230 = arith.truncf %229 : vector<2x128xf32> to vector<2x128xbf16>
    %c3_185 = arith.constant 3 : index
    %c0_186 = arith.constant 0 : index
    %c0_187 = arith.constant 0 : index
    %231 = vector.load %arg20[%c3_185, %c0_186, %c0_187] : memref<4x128x1xbf16, #tpu.memory_space<vmem>>, vector<1x128x1xbf16>
    %232 = vector.shape_cast %231 : vector<1x128x1xbf16> to vector<128x1xbf16>
    %cst_188 = arith.constant dense<0.000000e+00> : vector<2x1xf32>
    %233 = tpu.matmul %230, %232, %cst_188 {dimension_numbers = #tpu.dot_dimension_numbers<[1], [0], [0], [1], [0, 0, 1, 1], [], []>} : vector<2x128xbf16>, vector<128x1xbf16>, vector<2x1xf32> -> vector<2x1xf32>
    %234 = arith.addf %226, %233 : vector<2x1xf32>
    %c0_189 = arith.constant 0 : index
    %c0_190 = arith.constant 0 : index
    %235 = vector.load %arg21[%c0_189, %c0_190] : memref<1x1xf32, #tpu.memory_space<vmem>>, vector<1x1xf32>
    %236 = vector.broadcast %235 : vector<1x1xf32> to vector<2x1xf32>
    %237 = arith.addf %234, %236 : vector<2x1xf32>
    %cst_191 = arith.constant 0.000000e+00 : f32
    %238 = vector.broadcast %cst_191 : f32 to vector<2x1xf32>
    %239 = arith.subf %238, %237 : vector<2x1xf32>
    %240 = math.exp %239 : vector<2x1xf32>
    %cst_192 = arith.constant 1.000000e+00 : f32
    %241 = vector.broadcast %cst_192 : f32 to vector<2x1xf32>
    %242 = arith.addf %241, %240 : vector<2x1xf32>
    %cst_193 = arith.constant 1.000000e+00 : f32
    %243 = vector.broadcast %cst_193 : f32 to vector<2x1xf32>
    %244 = arith.divf %243, %242 : vector<2x1xf32>
    %c0_194 = arith.constant 0 : index
    %c0_195 = arith.constant 0 : index
    %245 = vector.load %arg22[%c0_194, %c0_195] : memref<2x1xf32, #tpu.memory_space<vmem>>, vector<2x1xf32>
    tpu.vector_store %arg22[%c0_194, %c0_195], %244 {strides = array<i32>} : memref<2x1xf32, #tpu.memory_space<vmem>>, vector<2x1xf32>,
    return
  }
}

</mosaic_0001>

<bundles_post_ra>
// kernel: forward.1
= control target key start
LH: loop header
LB: loop body
LE: loop exit
PB: predicated region body
PF: predicated region fallthrough
CT: control target
= control target key end

     0   :  { %s6856_s0 = inlined_call_operand.vmem [shape: f32[64,96], index: 0, kind: input, shape index: {}]   ;;  %s6857_s1 = inlined_call_operand.hbm [shape: bf16[4,32,64], index: 1, kind: input, shape index: {}]   ;;  %s6858_s2 = inlined_call_operand.vmem [shape: bf16[4,96,128], index: 2, kind: input, shape index: {}]   ;;  %s6859_s3 = inlined_call_operand.hbm [shape: f32[128,8], index: 3, kind: input, shape index: {}]   ;;  %s6860_s4 = inlined_call_operand.hbm [shape: f32[8,128], index: 4, kind: input, shape index: {}]   ;;  %s6861_s5 = inlined_call_operand.hbm [shape: f32[1,8], index: 5, kind: input, shape index: {}]   ;;  %s6862_s6 = inlined_call_operand.hbm [shape: f32[1,8], index: 6, kind: input, shape index: {}]   ;;  %s6863_s7 = inlined_call_operand.hbm [shape: bf16[4,16,32], index: 7, kind: input, shape index: {}]   ;;  %s6864_s8 = inlined_call_operand.vmem [shape: bf16[4,128,128], index: 8, kind: input, shape index: {}]   ;;  %s6865_s9 = inlined_call_operand.hbm [shape: f32[128,16], index: 9, kind: input, shape index: {}]   ;;  %s6866_s10 = inlined_call_operand.hbm [shape: f32[16,128], index: 10, kind: input, shape index: {}]   ;;  %s6867_s11 = inlined_call_operand.hbm [shape: f32[1,16], index: 11, kind: input, shape index: {}]   ;;  %s6868_s12 = inlined_call_operand.hbm [shape: f32[1,16], index: 12, kind: input, shape index: {}]   ;;  %s6869_s13 = inlined_call_operand.hbm [shape: bf16[3,8,16], index: 13, kind: input, shape index: {}]   ;;  %s6870_s14 = inlined_call_operand.vmem [shape: bf16[3,128,128], index: 14, kind: input, shape index: {}]   ;;  %s6871_s15 = inlined_call_operand.hbm [shape: f32[128,32], index: 15, kind: input, shape index: {}]   ;;  %s6872_s16 = inlined_call_operand.hbm [shape: f32[32,128], index: 16, kind: input, shape index: {}]   ;;  %s6873_s17 = inlined_call_operand.hbm [shape: f32[1,32], index: 17, kind: input, shape index: {}]   ;;  %s6874_s18 = inlined_call_operand.vmem [shape: f32[1,32], index: 18, kind: input, shape index: {}]   ;;  %s6875_s19 = inlined_call_operand.vmem [shape: bf16[4,2,8], index: 19, kind: input, shape index: {}]   ;;  %s6876_s20 = inlined_call_operand.vmem [shape: bf16[4,128,1], index: 20, kind: input, shape index: {}]   ;;  %s6877_s21 = inlined_call_operand.<no memory space> [shape: f32[1,1], index: 21, kind: input, shape index: {}]   ;;  %s6878_s22 = inlined_call_operand.vmem [shape: f32[2,1], index: 22, kind: output, shape index: {}]  }
   0x1   :  { %6886 = sst [smem:[#allocation33_spill]] %s6856_s0  ;;  %v27_v0 = vstv %s6877_s21 }
   0x2   :  { %6887 = sst [smem:[#allocation34_spill]] %s6857_s1  ;;  %28 = vst [vmem:[#allocation2] sm:$0x1] %v27_v0 }
   0x3   :  { %6888 = sst [smem:[#allocation35_spill]] %s6858_s2 }
   0x4   :  { %6889 = sst [smem:[#allocation36_spill]] %s6859_s3 }
   0x5   :  { %6890 = sst [smem:[#allocation37_spill]] %s6860_s4 }
   0x6   :  { %6891 = sst [smem:[#allocation38_spill]] %s6861_s5 }
   0x7   :  { %6892 = sst [smem:[#allocation39_spill]] %s6862_s6 }
   0x8   :  { %6893 = sst [smem:[#allocation40_spill]] %s6878_s22 }
   0x9   :  { %29 = vsyncpa [#allocation4], 0 }
   0xa   :  { %30 = vsyncpa [#allocation6], 0 }
   0xb   :  { %31 = vsyncpa [#allocation9], 0 }
   0xc   :  { %32 = vsyncpa [#allocation12], 0 }
   0xd   :  { %33 = vsyncpa [#allocation15], 0 }
   0xe   :  { %34 = vsyncpa [#allocation18], 0 }
   0xf   :  { %35 = vsyncpa [#allocation21], 0 }
  0x10   :  { %36 = vsyncpa [#allocation24], 0  ;;  %s5731_s29 = smov [#allocation5]   ;;  %s6894_s23 = sld [smem:[#allocation36_spill]] }
  0x11   :  { %s58_s30 = sshll.u32 %s5731_s29, 4  ;;  %s59_s30 = int_to_ptr.vmem [resolvable:$true] %s58_s30 }
  0x16   :  { %s5407_s1 = scalar_lea.hbm %s6894_s23, 2048 }
  0x17   :  { %p5408_p0 = scmp.ne.s32.totalorder %s6894_s23, %s5407_s1  ;;  %p5411_p1 = scmp.lt.u32.totalorder %s5407_s1, %s6894_s23 }
  0x19   :  { %p5413_p2 = pnand %p5411_p1, %p5408_p0 }
  0x1b   :  { %5416 = shalt.err (!%p5413_p2)
}
  0x1c   :  { %s5417_s25 = scalar_lea.vmem %s59_s30, 2048  ;;  %p5422_p4 = scmp.lt.s32.totalorder %s59_s30, %s59_s30 }
  0x1d   :  { %p5418_p3 = scmp.ne.s32.totalorder %s59_s30, %s5417_s25  ;;  %p5423_p5 = scmp.lt.s32.totalorder %s5417_s25, %s5417_s25 }
  0x1f   :  { %p5424_p6 = por %p5423_p5, %p5422_p4 }
  0x21   :  { %p5425_p7 = pnand %p5424_p6, %p5418_p3 }
  0x23   :  { %5428 = shalt.err (!%p5425_p7)
}
  0x24   :  { %s5732_s26 = smov 128   ;;  %s5733_s2 = smov 8  }
  0x25   :  { %64 = dma.hbm_to_vmem [thread:$0]  %s6894_s23, 2048, %s59_s30, [#allocation6], %s5732_s26, %s5732_s26, %s5733_s2  }
  0x26   :  { %s5734_s28 = smov [#allocation8]   ;;  %s6895_s1 = sld [smem:[#allocation38_spill]] }
  0x27   :  { %s81_s29 = sshll.u32 %s5734_s28, 4  ;;  %s82_s29 = int_to_ptr.vmem [resolvable:$true] %s81_s29 }
  0x2c   :  { %s5429_s5 = scalar_lea.hbm %s6895_s1, 16 }
  0x2d   :  { %p5430_p8 = scmp.ne.s32.totalorder %s6895_s1, %s5429_s5  ;;  %p5433_p9 = scmp.lt.u32.totalorder %s5429_s5, %s6895_s1 }
  0x2f   :  { %p5435_p10 = pnand %p5433_p9, %p5430_p8 }
  0x31   :  { %5438 = shalt.err (!%p5435_p10)
}
  0x32   :  { %s5439_s22 = scalar_lea.vmem %s82_s29, 16  ;;  %s5443_s30 = scalar_lea.vmem %s82_s29, 32 }
  0x33   :  { %p5440_p11 = scmp.ne.s32.totalorder %s82_s29, %s5439_s22  ;;  %p5444_p12 = scmp.lt.s32.totalorder %s82_s29, %s82_s29 }
  0x34   :  { %p5445_p13 = scmp.lt.s32.totalorder %s5443_s30, %s5439_s22 }
  0x36   :  { %p5446_p0 = por %p5445_p13, %p5444_p12 }
  0x38   :  { %p5447_p1 = pnand %p5446_p0, %p5440_p11 }
  0x3a   :  { %5450 = shalt.err (!%p5447_p1)
}
  0x3b   :  { %84 = dma.hbm_to_vmem [thread:$0]  %s6895_s1, 16, %s82_s29, [#allocation9]  }
  0x3c   :  { %s5735_s3 = smov [#allocation11]   ;;  %s5736_s4 = smov [#allocation14]  }
  0x3d   :  { %s100_s28 = sshll.u32 %s5735_s3, 4  ;;  %s126_s0 = sshll.u32 %s5736_s4, 4  ;;  %s101_s28 = int_to_ptr.vmem [resolvable:$true] %s100_s28  ;;  %s5897_s0 = int_to_ptr.vmem [resolvable:$true] %s126_s0 }
  0x3e   :  { %s5451_s21 = scalar_lea.hbm %s6863_s7, 512 }
  0x3f   :  { %p5452_p2 = scmp.ne.s32.totalorder %s6863_s7, %s5451_s21  ;;  %p5455_p3 = scmp.lt.u32.totalorder %s5451_s21, %s6863_s7 }
  0x41   :  { %p5457_p4 = pnand %p5455_p3, %p5452_p2 }
  0x43   :  { %5460 = shalt.err (!%p5457_p4)
}
  0x44   :  { %s5461_s29 = scalar_lea.vmem %s101_s28, 512  ;;  %p5466_p6 = scmp.lt.s32.totalorder %s101_s28, %s101_s28 }
  0x45   :  { %p5462_p5 = scmp.ne.s32.totalorder %s101_s28, %s5461_s29  ;;  %p5467_p7 = scmp.lt.s32.totalorder %s5461_s29, %s5461_s29 }
  0x47   :  { %p5468_p8 = por %p5467_p7, %p5466_p6 }
  0x49   :  { %p5469_p9 = pnand %p5468_p8, %p5462_p5 }
  0x4b   :  { %5472 = shalt.err (!%p5469_p9)
}
  0x4c   :  { %s5737_s1 = smov 64   ;;  %s5738_s23 = smov 4  }
  0x4d   :  { %106 = dma.hbm_to_vmem [thread:$0]  %s6863_s7, 512, %s101_s28, [#allocation12], %s5737_s1, %s5737_s1, %s5738_s23  }
  0x4e   :  { %s5473_s24 = scalar_lea.hbm %s6866_s10, 256 }
  0x4f   :  { %p5474_p10 = scmp.ne.s32.totalorder %s6866_s10, %s5473_s24  ;;  %p5477_p11 = scmp.lt.u32.totalorder %s5473_s24, %s6866_s10 }
  0x51   :  { %p5479_p12 = pnand %p5477_p11, %p5474_p10 }
  0x53   :  { %5482 = shalt.err (!%p5479_p12)
}
  0x54   :  { %s5483_s30 = scalar_lea.vmem %s5897_s0, 256  ;;  %p5488_p0 = scmp.lt.s32.totalorder %s5897_s0, %s5897_s0 }
  0x55   :  { %p5484_p13 = scmp.ne.s32.totalorder %s5897_s0, %s5483_s30  ;;  %p5489_p1 = scmp.lt.s32.totalorder %s5483_s30, %s5483_s30 }
  0x57   :  { %p5490_p2 = por %p5489_p1, %p5488_p0 }
  0x59   :  { %p5491_p3 = pnand %p5490_p2, %p5484_p13 }
  0x5b   :  { %5494 = shalt.err (!%p5491_p3)
}
  0x5c   :  { %132 = dma.hbm_to_vmem [thread:$0]  %s6866_s10, 256, %s5897_s0, [#allocation15], %s5732_s26, %s5732_s26, %s5733_s2  }
  0x5d   :  { %s5739_s29 = smov [#allocation17]   ;;  %s5740_s3 = smov [#allocation20]  }
  0x5e   :  { %s149_s27 = sshll.u32 %s5739_s29, 4  ;;  %s172_s4 = sshll.u32 %s5740_s3, 4  ;;  %s150_s27 = int_to_ptr.vmem [resolvable:$true] %s149_s27  ;;  %s5934_s4 = int_to_ptr.vmem [resolvable:$true] %s172_s4 }
  0x5f   :  { %s5495_s21 = scalar_lea.hbm %s6868_s12, 16 }
  0x60   :  { %p5496_p4 = scmp.ne.s32.totalorder %s6868_s12, %s5495_s21  ;;  %p5499_p5 = scmp.lt.u32.totalorder %s5495_s21, %s6868_s12 }
  0x62   :  { %p5501_p6 = pnand %p5499_p5, %p5496_p4 }
  0x64   :  { %5504 = shalt.err (!%p5501_p6)
}
  0x65   :  { %s5505_s10 = scalar_lea.vmem %s150_s27, 16  ;;  %s5509_s0 = scalar_lea.vmem %s150_s27, 32 }
  0x66   :  { %p5506_p7 = scmp.ne.s32.totalorder %s150_s27, %s5505_s10  ;;  %p5510_p8 = scmp.lt.s32.totalorder %s150_s27, %s150_s27 }
  0x67   :  { %p5511_p9 = scmp.lt.s32.totalorder %s5509_s0, %s5505_s10 }
  0x69   :  { %p5512_p10 = por %p5511_p9, %p5510_p8 }
  0x6b   :  { %p5513_p11 = pnand %p5512_p10, %p5506_p7 }
  0x6d   :  { %5516 = shalt.err (!%p5513_p11)
}
  0x6e   :  { %152 = dma.hbm_to_vmem [thread:$0]  %s6868_s12, 16, %s150_s27, [#allocation18]  }
  0x6f   :  { %s5517_s5 = scalar_lea.hbm %s6871_s15, 2048 }
  0x70   :  { %p5518_p12 = scmp.ne.s32.totalorder %s6871_s15, %s5517_s5  ;;  %p5521_p13 = scmp.lt.u32.totalorder %s5517_s5, %s6871_s15 }
  0x72   :  { %p5523_p0 = pnand %p5521_p13, %p5518_p12 }
  0x74   :  { %5526 = shalt.err (!%p5523_p0)
}
  0x75   :  { %s5527_s25 = scalar_lea.vmem %s5934_s4, 2048  ;;  %p5532_p2 = scmp.lt.s32.totalorder %s5934_s4, %s5934_s4 }
  0x76   :  { %p5528_p1 = scmp.ne.s32.totalorder %s5934_s4, %s5527_s25  ;;  %p5533_p3 = scmp.lt.s32.totalorder %s5527_s25, %s5527_s25 }
  0x78   :  { %p5534_p4 = por %p5533_p3, %p5532_p2 }
  0x7a   :  { %p5535_p5 = pnand %p5534_p4, %p5528_p1 }
  0x7c   :  { %5538 = shalt.err (!%p5535_p5)
}
  0x7d   :  { %178 = dma.hbm_to_vmem [thread:$0]  %s6871_s15, 2048, %s5934_s4, [#allocation21], %s5732_s26, %s5732_s26, %s5733_s2  }
  0x7e   :  { %s5741_s30 = smov [#allocation3]   ;;  %s5742_s0 = smov [#allocation7]  }
  0x7f   :  { %s44_s10 = sshll.u32 %s5741_s30, 4  ;;  %s71_s7 = sshll.u32 %s5742_s0, 4  ;;  %s45_s10 = int_to_ptr.vmem [resolvable:$true] %s44_s10  ;;  %s72_s7 = int_to_ptr.vmem [resolvable:$true] %s71_s7 }
  0x80   :  { %s6896_s3 = sld [smem:[#allocation34_spill]] }
  0x86   :  { %s5539_s5 = scalar_lea.hbm %s6896_s3, 1024 }
  0x87   :  { %p5540_p6 = scmp.ne.s32.totalorder %s6896_s3, %s5539_s5  ;;  %p5543_p7 = scmp.lt.u32.totalorder %s5539_s5, %s6896_s3 }
  0x89   :  { %p5545_p8 = pnand %p5543_p7, %p5540_p6 }
  0x8b   :  { %5548 = shalt.err (!%p5545_p8)
}
  0x8c   :  { %s5549_s15 = scalar_lea.vmem %s45_s10, 1024  ;;  %p5554_p10 = scmp.lt.s32.totalorder %s45_s10, %s45_s10 }
  0x8d   :  { %p5550_p9 = scmp.ne.s32.totalorder %s45_s10, %s5549_s15  ;;  %p5555_p11 = scmp.lt.s32.totalorder %s5549_s15, %s5549_s15 }
  0x8f   :  { %p5556_p12 = por %p5555_p11, %p5554_p10 }
  0x91   :  { %p5557_p13 = pnand %p5556_p12, %p5550_p9 }
  0x93   :  { %5560 = shalt.err (!%p5557_p13)
}
  0x94   :  { %50 = dma.hbm_to_vmem [thread:$0]  %s6896_s3, 1024, %s45_s10, [#allocation4], %s5737_s1, %s5737_s1, %s5738_s23  }
  0x95   :  { %s6897_s30 = sld [smem:[#allocation37_spill]] }
  0x9b   :  { %s5561_s0 = scalar_lea.hbm %s6897_s30, 128 }
  0x9c   :  { %p5562_p0 = scmp.ne.s32.totalorder %s6897_s30, %s5561_s0  ;;  %p5565_p1 = scmp.lt.u32.totalorder %s5561_s0, %s6897_s30 }
  0x9e   :  { %p5567_p2 = pnand %p5565_p1, %p5562_p0 }
  0xa0   :  { %5570 = shalt.err (!%p5567_p2)
}
  0xa1   :  { %s5571_s21 = scalar_lea.vmem %s72_s7, 128  ;;  %p5576_p4 = scmp.lt.s32.totalorder %s72_s7, %s72_s7 }
  0xa2   :  { %p5572_p3 = scmp.ne.s32.totalorder %s72_s7, %s5571_s21  ;;  %p5577_p5 = scmp.lt.s32.totalorder %s5571_s21, %s5571_s21 }
  0xa4   :  { %p5578_p6 = por %p5577_p5, %p5576_p4 }
  0xa6   :  { %p5579_p7 = pnand %p5578_p6, %p5572_p3 }
  0xa8   :  { %5582 = shalt.err (!%p5579_p7)
}
  0xa9   :  { %74 = dma.hbm_to_vmem [thread:$0]  %s6897_s30, 128, %s72_s7, [#allocation6]  }
  0xaa   :  { %s5743_s6 = smov [#allocation10]   ;;  %s5744_s15 = smov [#allocation13]  }
  0xab   :  { %s91_s22 = sshll.u32 %s5743_s6, 4  ;;  %s114_s4 = sshll.u32 %s5744_s15, 4  ;;  %s92_s22 = int_to_ptr.vmem [resolvable:$true] %s91_s22  ;;  %s5995_s4 = int_to_ptr.vmem [resolvable:$true] %s114_s4 }
  0xac   :  { %s6898_s27 = sld [smem:[#allocation39_spill]] }
  0xb2   :  { %s5583_s0 = scalar_lea.hbm %s6898_s27, 16 }
  0xb3   :  { %p5584_p8 = scmp.ne.s32.totalorder %s6898_s27, %s5583_s0  ;;  %p5587_p9 = scmp.lt.u32.totalorder %s5583_s0, %s6898_s27 }
  0xb5   :  { %p5589_p10 = pnand %p5587_p9, %p5584_p8 }
  0xb7   :  { %5592 = shalt.err (!%p5589_p10)
}
  0xb8   :  { %s5593_s7 = scalar_lea.vmem %s92_s22, 16  ;;  %s5597_s30 = scalar_lea.vmem %s92_s22, 32 }
  0xb9   :  { %p5594_p11 = scmp.ne.s32.totalorder %s92_s22, %s5593_s7  ;;  %p5598_p12 = scmp.lt.s32.totalorder %s92_s22, %s92_s22 }
  0xba   :  { %p5599_p13 = scmp.lt.s32.totalorder %s5597_s30, %s5593_s7 }
  0xbc   :  { %p5600_p0 = por %p5599_p13, %p5598_p12 }
  0xbe   :  { %p5601_p1 = pnand %p5600_p0, %p5594_p11 }
  0xc0   :  { %5604 = shalt.err (!%p5601_p1)
}
  0xc1   :  { %94 = dma.hbm_to_vmem [thread:$0]  %s6898_s27, 16, %s92_s22, [#allocation9]  }
  0xc2   :  { %s5605_s15 = scalar_lea.hbm %s6865_s9, 2048 }
  0xc3   :  { %p5606_p2 = scmp.ne.s32.totalorder %s6865_s9, %s5605_s15  ;;  %p5609_p3 = scmp.lt.u32.totalorder %s5605_s15, %s6865_s9 }
  0xc5   :  { %p5611_p4 = pnand %p5609_p3, %p5606_p2 }
  0xc7   :  { %5614 = shalt.err (!%p5611_p4)
}
  0xc8   :  { %s5615_s29 = scalar_lea.vmem %s5995_s4, 2048  ;;  %p5620_p6 = scmp.lt.s32.totalorder %s5995_s4, %s5995_s4 }
  0xc9   :  { %p5616_p5 = scmp.ne.s32.totalorder %s5995_s4, %s5615_s29  ;;  %p5621_p7 = scmp.lt.s32.totalorder %s5615_s29, %s5615_s29 }
  0xcb   :  { %p5622_p8 = por %p5621_p7, %p5620_p6 }
  0xcd   :  { %p5623_p9 = pnand %p5622_p8, %p5616_p5 }
  0xcf   :  { %5626 = shalt.err (!%p5623_p9)
}
  0xd0   :  { %120 = dma.hbm_to_vmem [thread:$0]  %s6865_s9, 2048, %s5995_s4, [#allocation12], %s5732_s26, %s5732_s26, %s5733_s2  }
  0xd1   :  { %s5745_s5 = smov [#allocation16]   ;;  %s5746_s7 = smov [#allocation19]  }
  0xd2   :  { %s139_s24 = sshll.u32 %s5745_s5, 4  ;;  %s158_s30 = sshll.u32 %s5746_s7, 4  ;;  %s140_s24 = int_to_ptr.vmem [resolvable:$true] %s139_s24  ;;  %s6029_s30 = int_to_ptr.vmem [resolvable:$true] %s158_s30 }
  0xd3   :  { %s5627_s3 = scalar_lea.hbm %s6867_s11, 16 }
  0xd4   :  { %p5628_p10 = scmp.ne.s32.totalorder %s6867_s11, %s5627_s3  ;;  %p5631_p11 = scmp.lt.u32.totalorder %s5627_s3, %s6867_s11 }
  0xd6   :  { %p5633_p12 = pnand %p5631_p11, %p5628_p10 }
  0xd8   :  { %5636 = shalt.err (!%p5633_p12)
}
  0xd9   :  { %s5637_s9 = scalar_lea.vmem %s140_s24, 16  ;;  %s5641_s4 = scalar_lea.vmem %s140_s24, 32 }
  0xda   :  { %p5638_p13 = scmp.ne.s32.totalorder %s140_s24, %s5637_s9  ;;  %p5642_p0 = scmp.lt.s32.totalorder %s140_s24, %s140_s24 }
  0xdb   :  { %p5643_p1 = scmp.lt.s32.totalorder %s5641_s4, %s5637_s9 }
  0xdd   :  { %p5644_p2 = por %p5643_p1, %p5642_p0 }
  0xdf   :  { %p5645_p3 = pnand %p5644_p2, %p5638_p13 }
  0xe1   :  { %5648 = shalt.err (!%p5645_p3)
}
  0xe2   :  { %142 = dma.hbm_to_vmem [thread:$0]  %s6867_s11, 16, %s140_s24, [#allocation15]  }
  0xe3   :  { %s5649_s27 = scalar_lea.hbm %s6869_s13, 192 }
  0xe4   :  { %p5650_p4 = scmp.ne.s32.totalorder %s6869_s13, %s5649_s27  ;;  %p5653_p5 = scmp.lt.u32.totalorder %s5649_s27, %s6869_s13 }
  0xe6   :  { %p5655_p6 = pnand %p5653_p5, %p5650_p4 }
  0xe8   :  { %5658 = shalt.err (!%p5655_p6)
}
  0xe9   :  { %s5659_s3 = scalar_lea.vmem %s6029_s30, 192  ;;  %p5664_p8 = scmp.lt.s32.totalorder %s6029_s30, %s6029_s30 }
  0xea   :  { %p5660_p7 = scmp.ne.s32.totalorder %s6029_s30, %s5659_s3  ;;  %p5665_p9 = scmp.lt.s32.totalorder %s5659_s3, %s5659_s3 }
  0xec   :  { %p5666_p10 = por %p5665_p9, %p5664_p8 }
  0xee   :  { %p5667_p11 = pnand %p5666_p10, %p5660_p7 }
  0xf0   :  { %5670 = shalt.err (!%p5667_p11)
}
  0xf1   :  { %164 = dma.hbm_to_vmem [thread:$0]  %s6869_s13, 192, %s6029_s30, [#allocation18], %s5737_s1, %s5737_s1, %s5738_s23  }
  0xf2   :  { %s5747_s6 = smov [#allocation22]   ;;  %s5748_s25 = smov [#allocation23]  }
  0xf3   :  { %s184_s15 = sshll.u32 %s5747_s6, 4  ;;  %s197_s12 = sshll.u32 %s5748_s25, 4  ;;  %s185_s15 = int_to_ptr.vmem [resolvable:$true] %s184_s15  ;;  %s198_s12 = int_to_ptr.vmem [resolvable:$true] %s197_s12 }
  0xf4   :  { %s5671_s0 = scalar_lea.hbm %s6872_s16, 512 }
  0xf5   :  { %p5672_p12 = scmp.ne.s32.totalorder %s6872_s16, %s5671_s0  ;;  %p5675_p13 = scmp.lt.u32.totalorder %s5671_s0, %s6872_s16 }
  0xf7   :  { %p5677_p0 = pnand %p5675_p13, %p5672_p12 }
  0xf9   :  { %5680 = shalt.err (!%p5677_p0)
}
  0xfa   :  { %s5681_s13 = scalar_lea.vmem %s185_s15, 512  ;;  %p5686_p2 = scmp.lt.s32.totalorder %s185_s15, %s185_s15 }
  0xfb   :  { %p5682_p1 = scmp.ne.s32.totalorder %s185_s15, %s5681_s13  ;;  %p5687_p3 = scmp.lt.s32.totalorder %s5681_s13, %s5681_s13 }
  0xfd   :  { %p5688_p4 = por %p5687_p3, %p5686_p2 }
  0xff   :  { %p5689_p5 = pnand %p5688_p4, %p5682_p1 }
 0x101   :  { %5692 = shalt.err (!%p5689_p5)
}
 0x102   :  { %190 = dma.hbm_to_vmem [thread:$0]  %s6872_s16, 512, %s185_s15, [#allocation21], %s5732_s26, %s5732_s26, %s5733_s2  }
 0x103   :  { %s5693_s7 = scalar_lea.hbm %s6873_s17, 16 }
 0x104   :  { %p5694_p6 = scmp.ne.s32.totalorder %s6873_s17, %s5693_s7  ;;  %p5697_p7 = scmp.lt.u32.totalorder %s5693_s7, %s6873_s17 }
 0x106   :  { %p5699_p8 = pnand %p5697_p7, %p5694_p6 }
 0x108   :  { %5702 = shalt.err (!%p5699_p8)
}
 0x109   :  { %s5703_s24 = scalar_lea.vmem %s198_s12, 16  ;;  %s5707_s6 = scalar_lea.vmem %s198_s12, 32 }
 0x10a   :  { %p5704_p9 = scmp.ne.s32.totalorder %s198_s12, %s5703_s24  ;;  %p5708_p10 = scmp.lt.s32.totalorder %s198_s12, %s198_s12 }
 0x10b   :  { %p5709_p11 = scmp.lt.s32.totalorder %s5707_s6, %s5703_s24 }
 0x10d   :  { %p5710_p12 = por %p5709_p11, %p5708_p10 }
 0x10f   :  { %p5711_p13 = pnand %p5710_p12, %p5704_p9 }
 0x111   :  { %5714 = shalt.err (!%p5711_p13)
}
 0x112   :  { %200 = dma.hbm_to_vmem [thread:$0]  %s6873_s17, 16, %s198_s12, [#allocation24]  }
 0x113   :  { %5715 = dma.done.wait [#allocation4], 1024  }
 0x114   :  { %5716 = vsyncadd [#allocation4], 4294966272 }
 0x115   :  { %5717 = dma.done.wait [#allocation6], 2176  }
 0x116   :  { %5718 = vsyncadd [#allocation6], 4294965120 }
 0x117   :  { %5719 = dma.done.wait [#allocation9], 32  }
 0x118   :  { %5720 = vsyncadd [#allocation9], 4294967264 }
 0x119   :  { %5721 = dma.done.wait [#allocation12], 2560  }
 0x11a   :  { %5722 = vsyncadd [#allocation12], 4294964736 }
 0x11b   :  { %5723 = dma.done.wait [#allocation15], 272  }
 0x11c   :  { %5724 = vsyncadd [#allocation15], 4294967024 }
 0x11d   :  { %5725 = dma.done.wait [#allocation18], 208  }
 0x11e   :  { %5726 = vsyncadd [#allocation18], 4294967088 }
 0x11f   :  { %5727 = dma.done.wait [#allocation21], 2560  }
 0x120   :  { %5728 = vsyncadd [#allocation21], 4294964736 }
 0x121   :  { %5729 = dma.done.wait [#allocation24], 16  }
 0x122   :  { %5730 = vsyncadd [#allocation24], 4294967280  ;;  %s6899_s25 = sld [smem:[#allocation33_spill]]  ;;  %vm278_vm0 = vcmask 523264   ;;  %v5273_v9 = vld [vmem:[#allocation3 + $0x10] sm:$0xff]   ;;  %v5275_v12 = vld [vmem:[#allocation3] sm:$0xff]  }
 0x123   :  { %4416 = vmatprep.mubr.msk.bf16.mxu1 %vm278_vm0, %v5273_v9  ;;  %4404 = vmatprep.mubr.msk.bf16.mxu0 %vm278_vm0, %v5275_v12  ;;  %v5274_v15 = vld [vmem:[#allocation3 + $0x18] sm:$0xff]   ;;  %s6900_s10 = sld [smem:[#allocation35_spill]]  ;;  %v5276_v17 = vld [vmem:[#allocation3 + $0x8] sm:$0xff]   ;;  %v5277_v18 = vld [vmem:[#allocation3 + $0x20] sm:$0xff]   ;;  %v5749_v31 = vmov 0.0|0.0   ;;  %vm469_vm1 = vcmask 785408  }
 0x124   :  { %v5278_v23 = vld [vmem:[#allocation3 + $0x28] sm:$0xff]   ;;  %v5279_v24 = vld [vmem:[#allocation3 + $0x30] sm:$0xff]   ;;  %v5280_v25 = vld [vmem:[#allocation3 + $0x38] sm:$0xff]   ;;  %vm5750_vm2 = vmmov 0   ;;  %vm1167_vm3 = vcmask 64512   ;;  %vm1351_vm8 = vcmask 261120  }
 0x125   :  { %v998_v28 = vld [vmem:[#allocation5] sm:$0xff]  ;;  %v999_v29 = vld [vmem:[#allocation5 + $0x8] sm:$0xff]  ;;  %v1000_v30 = vld [vmem:[#allocation5 + $0x10] sm:$0xff]  ;;  %vm2169_vm9 = vcmask 130048   ;;  %vm3136_vm13 = vcmask 1043456   ;;  %vm3754_vm14 = vcmask 1024  }
 0x126   :  { %v6154_v32 = vpack.c.bf16 %v999_v29, %v998_v28  ;;  %v1001_v33 = vld [vmem:[#allocation5 + $0x18] sm:$0xff]  ;;  %v1002_v35 = vld [vmem:[#allocation5 + $0x20] sm:$0xff]  ;;  %v1003_v36 = vld [vmem:[#allocation5 + $0x28] sm:$0xff]  ;;  %v5751_v29 = vmov 0.0   ;;  %s6901_s28 = sld [smem:[#allocation40_spill]] }
 0x127   :  { %v6157_v34 = vpack.c.bf16 %v1001_v33, %v1000_v30  ;;  %v6161_v37 = vpack.c.bf16 %v1003_v36, %v1002_v35  ;;  %v1013_v28 = vld [vmem:[#allocation5 + $0x78] sm:$0xff] }
 0x128   :  { %v252_v1 = vld [vmem:[%s6899_s25] sm:$0xff]  ;;  %v253_v2 = vld [vmem:[%s6899_s25 + $0x8] sm:$0xff]  ;;  %v254_v3 = vld [vmem:[%s6899_s25 + $0x10] sm:$0xff] }
 0x129   :  { %v260_v4 = vpack.c.bf16 %v253_v2, %v252_v1  ;;  %v255_v5 = vld [vmem:[%s6899_s25 + $0x18] sm:$0xff]  ;;  %v256_v7 = vld [vmem:[%s6899_s25 + $0x20] sm:$0xff]  ;;  %v257_v8 = vld [vmem:[%s6899_s25 + $0x28] sm:$0xff] }
 0x12a   :  { %v6102_v6 = vpack.c.bf16 %v255_v5, %v254_v3  ;;  %v258_v10 = vld [vmem:[%s6899_s25 + $0x30] sm:$0xff]  ;;  %v262_v11 = vpack.c.bf16 %v257_v8, %v256_v7  ;;  %v259_v13 = vld [vmem:[%s6899_s25 + $0x38] sm:$0xff]  ;;  %v5283_v20 = vld [vmem:[%s6900_s10 + $0x40] sm:$0xff]  }
 0x12b   :  { %4408 = vmatprep.subr.bf16.mxu1 %v260_v4  ;;  %4396 = vmatprep.subr.bf16.mxu0 %v260_v4  ;;  %v263_v14 = vpack.c.bf16 %v259_v13, %v258_v10  ;;  %v5281_v16 = vld [vmem:[%s6900_s10 + $0x30] sm:$0xff]   ;;  %v5282_v19 = vld [vmem:[%s6900_s10 + $0x38] sm:$0xff]   ;;  %v5284_v21 = vld [vmem:[%s6900_s10 + $0x48] sm:$0xff]  }
 0x12c   :  { %4409 = vmatpush3.bf16.msra.mxu1 %v260_v4  ;;  %4397 = vmatpush3.bf16.msra.mxu0 %v260_v4  ;;  %v5285_v22 = vld [vmem:[%s6900_s10 + $0x50] sm:$0xff]   ;;  %v5286_v26 = vld [vmem:[%s6900_s10 + $0x58] sm:$0xff]   ;;  %v5287_v27 = vld [vmem:[%s6900_s10] sm:$0xff]  }
 0x12d   :  { %4410 = vmatprep.subr.bf16.mxu1 %v6102_v6  ;;  %4398 = vmatprep.subr.bf16.mxu0 %v6102_v6  ;;  %v5288_v50 = vld [vmem:[%s6900_s10 + $0x8] sm:$0xff]   ;;  %v5289_v51 = vld [vmem:[%s6900_s10 + $0x10] sm:$0xff]   ;;  %v5290_v52 = vld [vmem:[%s6900_s10 + $0x18] sm:$0xff]  }
 0x12e   :  { %v5291_v54 = vld [vmem:[%s6900_s10 + $0x20] sm:$0xff]   ;;  %v5292_v60 = vld [vmem:[%s6900_s10 + $0x28] sm:$0xff]   ;;  %v5295_v0 = vld [vmem:[%s6900_s10 + $0x70] sm:$0xff]  }
 0x12f   :  { %v5293_v61 = vld [vmem:[%s6900_s10 + $0x60] sm:$0xff]   ;;  %v5294_v62 = vld [vmem:[%s6900_s10 + $0x68] sm:$0xff]   ;;  %v5299_v9 = vld [vmem:[%s6900_s10 + $0x90] sm:$0xff]  }
 0x130   :  { %4411 = vmatpush3.bf16.msra.mxu1 %v6102_v6  ;;  %4399 = vmatpush3.bf16.msra.mxu0 %v6102_v6  ;;  %v5297_v7 = vld [vmem:[%s6900_s10 + $0x80] sm:$0xff]   ;;  %v5298_v8 = vld [vmem:[%s6900_s10 + $0x88] sm:$0xff]   ;;  %v5300_v10 = vld [vmem:[%s6900_s10 + $0x98] sm:$0xff]  }
 0x131   :  { %4412 = vmatprep.subr.bf16.mxu1 %v262_v11  ;;  %4400 = vmatprep.subr.bf16.mxu0 %v262_v11  ;;  %v5302_v12 = vld [vmem:[%s6900_s10 + $0xa8] sm:$0xff]   ;;  %v5303_v13 = vld [vmem:[%s6900_s10 + $0xb0] sm:$0xff]  }
 0x134   :  { %4413 = vmatpush3.bf16.msra.mxu1 %v262_v11  ;;  %4401 = vmatpush3.bf16.msra.mxu0 %v262_v11 }
 0x135   :  { %4414 = vmatprep.subr.bf16.mxu1 %v263_v14  ;;  %4402 = vmatprep.subr.bf16.mxu0 %v263_v14 }
 0x138   :  { %4415 = vmatpush3.bf16.msra.mxu1 %v263_v14  ;;  %4403 = vmatpush3.bf16.msra.mxu0 %v263_v14 }
 0x139   :  { %4452 = vmatprep.subr.bf16.mxu1 %v260_v4  ;;  %4420 = vmatprep.subr.bf16.mxu0 %v5281_v16 }
 0x13b   :  { %4417 = vmatmul.mubr.msk.bf16.vlgmr.msra.gmra.mrb[0].mxu1 %vm278_vm0, %v5274_v15  ;;  %4405 = vmatmul.mubr.msk.bf16.vlgmr.msra.gmra.mrb[0].mxu0 %vm278_vm0, %v5276_v17  ;;  %v1004_v15 = vld [vmem:[#allocation5 + $0x30] sm:$0xff] }
 0x13c   :  { %4453 = vmatpush3.bf16.msra.mxu1 %v260_v4  ;;  %4460 = vmatprep.mubr.msk.bf16.mxu1 %vm278_vm0, %v5277_v18  ;;  %v1006_v18 = vld [vmem:[#allocation5 + $0x40] sm:$0xff] }
 0x13d   :  { %4454 = vmatprep.subr.bf16.mxu1 %v6102_v6  ;;  %4421 = vmatpush3.bf16.msra.mxu0 %v5281_v16  ;;  %v1005_v16 = vld [vmem:[#allocation5 + $0x38] sm:$0xff] }
 0x13e   :  { %4422 = vmatprep.subr.bf16.mxu0 %v5282_v19  ;;  %v5068_v17 = vpack.c.bf16 %v1005_v16, %v1004_v15 }
 0x140   :  { %4455 = vmatpush3.bf16.msra.mxu1 %v6102_v6 }
 0x141   :  { %4456 = vmatprep.subr.bf16.mxu1 %v262_v11  ;;  %4423 = vmatpush3.bf16.msra.mxu0 %v5282_v19  ;;  %v1007_v19 = vld [vmem:[#allocation5 + $0x48] sm:$0xff] }
 0x142   :  { %4424 = vmatprep.subr.bf16.mxu0 %v5283_v20 }
 0x144   :  { %4457 = vmatpush3.bf16.msra.mxu1 %v262_v11 }
 0x145   :  { %4458 = vmatprep.subr.bf16.mxu1 %v263_v14  ;;  %4425 = vmatpush3.bf16.msra.mxu0 %v5283_v20  ;;  %v5071_v20 = vpack.c.bf16 %v1007_v19, %v1006_v18 }
 0x146   :  { %4426 = vmatprep.subr.bf16.mxu0 %v5284_v21 }
 0x148   :  { %4459 = vmatpush3.bf16.msra.mxu1 %v263_v14 }
 0x149   :  { %4480 = vmatprep.subr.bf16.mxu1 %v260_v4  ;;  %4427 = vmatpush3.bf16.msra.mxu0 %v5284_v21  ;;  %v1008_v21 = vld [vmem:[#allocation5 + $0x50] sm:$0xff] }
 0x14a   :  { %4428 = vmatprep.subr.bf16.mxu0 %v5285_v22 }
 0x14b   :  { %4461 = vmatmul.mubr.msk.bf16.vlgmr.msra.gmra.mrb[4].mxu1 %vm278_vm0, %v5278_v23 }
 0x14c   :  { %4481 = vmatpush3.bf16.msra.mxu1 %v260_v4  ;;  %4488 = vmatprep.mubr.msk.bf16.mxu1 %vm278_vm0, %v5279_v24  ;;  %v1010_v24 = vld [vmem:[#allocation5 + $0x60] sm:$0xff] }
 0x14d   :  { %4482 = vmatprep.subr.bf16.mxu1 %v6102_v6  ;;  %4429 = vmatpush3.bf16.msra.mxu0 %v5285_v22  ;;  %v1009_v22 = vld [vmem:[#allocation5 + $0x58] sm:$0xff] }
 0x14e   :  { %4430 = vmatprep.subr.bf16.mxu0 %v5286_v26  ;;  %v5074_v23 = vpack.c.bf16 %v1009_v22, %v1008_v21 }
 0x150   :  { %4483 = vmatpush3.bf16.msra.mxu1 %v6102_v6  ;;  %v5296_v6 = vld [vmem:[%s6900_s10 + $0x78] sm:$0xff]  }
 0x151   :  { %4484 = vmatprep.subr.bf16.mxu1 %v262_v11  ;;  %4431 = vmatpush3.bf16.msra.mxu0 %v5286_v26 }
 0x152   :  { %4436 = vmatprep.subr.bf16.mxu0 %v5287_v27 }
 0x154   :  { %4485 = vmatpush3.bf16.msra.mxu1 %v262_v11  ;;  %v5301_v11 = vld [vmem:[%s6900_s10 + $0xa0] sm:$0xff]  }
 0x155   :  { %4486 = vmatprep.subr.bf16.mxu1 %v263_v14 }
 0x158   :  { %4487 = vmatpush3.bf16.msra.mxu1 %v263_v14  ;;  %v5304_v14 = vld [vmem:[%s6900_s10 + $0xb8] sm:$0xff]  }
 0x159   :  { %5058 = vmatprep.subr.bf16.mxu1 %v5749_v31 }
 0x15b   :  { %4489 = vmatmul.mubr.msk.bf16.vlgmr.msra.gmra.mrb[8].mxu1 %vm278_vm0, %v5280_v25  ;;  %v1011_v25 = vld [vmem:[#allocation5 + $0x68] sm:$0xff] }
 0x15c   :  { %5060 = vmatpush3.bf16.msra.mxu1 %v6154_v32  ;;  %v5077_v26 = vpack.c.bf16 %v1011_v25, %v1010_v24  ;;  %4540 = vmatprep.mubr.msk.f32.mxu1 %vm5750_vm2, %v5751_v29 }
 0x15d   :  { %5061 = vmatprep.subr.bf16.mxu1 %v5749_v31 }
 0x160   :  { %5063 = vmatpush3.bf16.msra.mxu1 %v6157_v34 }
 0x161   :  { %5064 = vmatprep.subr.bf16.mxu1 %v5749_v31 }
 0x164   :  { %5066 = vmatpush3.bf16.msra.mxu1 %v6161_v37 }
 0x165   :  { %5067 = vmatprep.subr.bf16.mxu1 %v5749_v31 }
 0x168   :  { %5069 = vmatpush3.bf16.msra.mxu1 %v5068_v17 }
 0x169   :  { %5070 = vmatprep.subr.bf16.mxu1 %v5749_v31 }
 0x16c   :  { %5072 = vmatpush3.bf16.msra.mxu1 %v5071_v20 }
 0x16d   :  { %5073 = vmatprep.subr.bf16.mxu1 %v5749_v31 }
 0x170   :  { %5075 = vmatpush3.bf16.msra.mxu1 %v5074_v23 }
 0x171   :  { %5076 = vmatprep.subr.bf16.mxu1 %v5749_v31 }
 0x174   :  { %5078 = vmatpush3.bf16.msra.mxu1 %v5077_v26 }
 0x175   :  { %5079 = vmatprep.subr.bf16.mxu1 %v5749_v31 }
 0x20e   :  { %v4418_v38 = vpop.f32.mrb[0].mxu1  ;;  %v4406_v39 = vpop.f32.mrb[0].mxu0 }
 0x20f   :  { %v403_v40 = vpop.f32.mrb[1].mxu1  ;;  %v319_v41 = vpop.f32.mrb[1].mxu0 }
 0x210   :  { %v4419_v42 = vpop.f32.mrb[2].mxu1  ;;  %v4407_v43 = vpop.f32.mrb[2].mxu0 }
 0x211   :  { %v419_v44 = vpack.c.bf16 %v4419_v42, %v4418_v38  ;;  %v406_v45 = vpop.f32.mrb[3].mxu1  ;;  %v335_v46 = vpack.c.bf16 %v4407_v43, %v4406_v39  ;;  %v322_v47 = vpop.f32.mrb[3].mxu0 }
 0x212   :  { %v418_v48 = vpack.c.bf16 %v406_v45, %v403_v40  ;;  %v334_v49 = vpack.c.bf16 %v322_v47, %v319_v41 }
 0x214   :  { %4432 = vmatprep.mubr.msk.bf16.mxu0 %vm469_vm1, %v418_v48 }
 0x215   :  { %4433 = vmatmul.mubr.msk.bf16.vlgmr.msra.gmra.mrb[4].mxu0 %vm469_vm1, %v419_v44 }
 0x216   :  { %4437 = vmatpush3.bf16.msra.mxu0 %v5287_v27  ;;  %4448 = vmatprep.mubr.msk.bf16.mxu0 %vm469_vm1, %v334_v49  ;;  %v1012_v27 = vld [vmem:[#allocation5 + $0x70] sm:$0xff] }
 0x217   :  { %4438 = vmatprep.subr.bf16.mxu0 %v5288_v50  ;;  %v5080_v30 = vpack.c.bf16 %v1013_v28, %v1012_v27 }
 0x219   :  { %5081 = vmatpush3.bf16.msra.mxu1 %v5080_v30 }
 0x21a   :  { %4439 = vmatpush3.bf16.msra.mxu0 %v5288_v50  ;;  %5082 = vmatprep.subr.bf16.mxu1 %v5749_v31 }
 0x21b   :  { %4440 = vmatprep.subr.bf16.mxu0 %v5289_v51 }
 0x21e   :  { %4441 = vmatpush3.bf16.msra.mxu0 %v5289_v51  ;;  %v4462_v53 = vpop.f32.mrb[4].mxu1 }
 0x21f   :  { %4442 = vmatprep.subr.bf16.mxu0 %v5290_v52  ;;  %v671_v55 = vpop.f32.mrb[5].mxu1 }
 0x220   :  { %v4463_v56 = vpop.f32.mrb[6].mxu1 }
 0x221   :  { %v687_v57 = vpack.c.bf16 %v4463_v56, %v4462_v53  ;;  %v674_v58 = vpop.f32.mrb[7].mxu1 }
 0x222   :  { %4443 = vmatpush3.bf16.msra.mxu0 %v5290_v52  ;;  %v686_v59 = vpack.c.bf16 %v674_v58, %v671_v55  ;;  %v1166_v58 = vld [vmem:[#allocation7] sm:$0xff] }
 0x223   :  { %4444 = vmatprep.subr.bf16.mxu0 %v5291_v54 }
 0x226   :  { %4445 = vmatpush3.bf16.msra.mxu0 %v5291_v54 }
 0x227   :  { %4446 = vmatprep.subr.bf16.mxu0 %v5292_v60 }
 0x22a   :  { %4447 = vmatpush3.bf16.msra.mxu0 %v5292_v60 }
 0x22b   :  { %4464 = vmatprep.subr.bf16.mxu0 %v5293_v61 }
 0x22d   :  { %4449 = vmatmul.mubr.msk.bf16.vlgmr.msra.gmra.mrb[4].mxu0 %vm469_vm1, %v335_v46 }
 0x22e   :  { %4465 = vmatpush3.bf16.msra.mxu0 %v5293_v61  ;;  %4476 = vmatprep.mubr.msk.bf16.mxu0 %vm469_vm1, %v686_v59  ;;  %v4490_v63 = vpop.f32.mrb[8].mxu1 }
 0x22f   :  { %4466 = vmatprep.subr.bf16.mxu0 %v5294_v62  ;;  %v851_v1 = vpop.f32.mrb[9].mxu1 }
 0x230   :  { %v4491_v2 = vpop.f32.mrb[10].mxu1 }
 0x231   :  { %v867_v3 = vpack.c.bf16 %v4491_v2, %v4490_v63  ;;  %v854_v4 = vpop.f32.mrb[11].mxu1 }
 0x232   :  { %4467 = vmatpush3.bf16.msra.mxu0 %v5294_v62  ;;  %v866_v5 = vpack.c.bf16 %v854_v4, %v851_v1 }
 0x233   :  { %4468 = vmatprep.subr.bf16.mxu0 %v5295_v0 }
 0x236   :  { %4469 = vmatpush3.bf16.msra.mxu0 %v5295_v0 }
 0x237   :  { %4470 = vmatprep.subr.bf16.mxu0 %v5296_v6 }
 0x23a   :  { %4471 = vmatpush3.bf16.msra.mxu0 %v5296_v6 }
 0x23b   :  { %4472 = vmatprep.subr.bf16.mxu0 %v5297_v7 }
 0x23e   :  { %4473 = vmatpush3.bf16.msra.mxu0 %v5297_v7 }
 0x23f   :  { %4474 = vmatprep.subr.bf16.mxu0 %v5298_v8 }
 0x242   :  { %4475 = vmatpush3.bf16.msra.mxu0 %v5298_v8  ;;  %v1163_v8 = vld [vmem:[#allocation10] sm:$0x1] }
 0x243   :  { %4492 = vmatprep.subr.bf16.mxu0 %v5299_v9 }
 0x245   :  { %4477 = vmatmul.mubr.msk.bf16.vlgmr.msra.gmra.mrb[4].mxu0 %vm469_vm1, %v687_v57 }
 0x246   :  { %4493 = vmatpush3.bf16.msra.mxu0 %v5299_v9  ;;  %4504 = vmatprep.mubr.msk.bf16.mxu0 %vm469_vm1, %v866_v5  ;;  %v1159_v5 = vld [vmem:[#allocation8] sm:$0x1] }
 0x247   :  { %4494 = vmatprep.subr.bf16.mxu0 %v5300_v10 }
 0x24a   :  { %4495 = vmatpush3.bf16.msra.mxu0 %v5300_v10 }
 0x24b   :  { %4496 = vmatprep.subr.bf16.mxu0 %v5301_v11 }
 0x24e   :  { %4497 = vmatpush3.bf16.msra.mxu0 %v5301_v11  ;;  %v1314_v11 = vlaneseq }
 0x24f   :  { %4498 = vmatprep.subr.bf16.mxu0 %v5302_v12 }
 0x252   :  { %4499 = vmatpush3.bf16.msra.mxu0 %v5302_v12  ;;  %v1315_v12 = vshrl.u32 %v1314_v11, 7  ;;  %v5318_v11 = vld [vmem:[%s6864_s8 + $0x8] sm:$0xff]  }
 0x253   :  { %4500 = vmatprep.subr.bf16.mxu0 %v5303_v13 }
 0x256   :  { %4501 = vmatpush3.bf16.msra.mxu0 %v5303_v13  ;;  %v6278_v13 = vsub.s32 0, %v1315_v12 }
 0x257   :  { %4502 = vmatprep.subr.bf16.mxu0 %v5304_v14 }
 0x25a   :  { %4503 = vmatpush3.bf16.msra.mxu0 %v5304_v14 }
 0x25b   :  { %4596 = vmatprep.subr.bf16.mxu0 %v5751_v29 }
 0x25d   :  { %4505 = vmatmul.mubr.msk.bf16.vlgmr.msra.gmra.mrb[4].mxu0 %vm469_vm1, %v867_v3 }
 0x25e   :  { %4600 = vmatprep.mubr.msk.bf16.mxu0 %vm5750_vm2, %v5751_v29 }
 0x330   :  { %v6235_v33 = vpop.f32.mrb[4].mxu0 }
 0x331   :  { %v6237_v35 = vpop.f32.mrb[5].mxu0  ;;  %v987_v42 = vmul.f32 %v6235_v33, %v6235_v33 }
 0x332   :  { %v6239_v36 = vpop.f32.mrb[6].mxu0  ;;  %v985_v39 = vmul.f32 %v6237_v35, %v6237_v35 }
 0x333   :  { %v6241_v38 = vpop.f32.mrb[7].mxu0  ;;  %v988_v45 = vmul.f32 %v6239_v36, %v6239_v36 }
 0x334   :  { %v976_v40 = vadd.f32 %v6241_v38, %v6237_v35  ;;  %v986_v41 = vmul.f32 %v6241_v38, %v6241_v38 }
 0x336   :  { %v977_v43 = vadd.f32 %v6235_v33, %v976_v40  ;;  %v989_v44 = vadd.f32 %v986_v41, %v985_v39 }
 0x338   :  { %v978_v46 = vadd.f32 %v6239_v36, %v977_v43  ;;  %v990_v47 = vadd.f32 %v989_v44, %v987_v42  ;;  %v5305_v43 = vld [vmem:[#allocation11 + $0x8] sm:$0xff]   ;;  %v5307_v44 = vld [vmem:[#allocation11] sm:$0xff]  }
 0x33a   :  { %v979_v48 = vrot.slane %v978_v46, 4  ;;  %v991_v49 = vadd.f32 %v990_v47, %v988_v45  ;;  %v5309_v45 = vld [vmem:[%s6864_s8 + $0x40] sm:$0xff]  }
 0x33b   :  { %v5306_v47 = vld [vmem:[#allocation11 + $0x10] sm:$0xff]  }
 0x33c   :  { %v980_v50 = vadd.f32 %v979_v48, %v978_v46  ;;  %v992_v55 = vrot.slane %v991_v49, 4  ;;  %v5310_v46 = vld [vmem:[%s6864_s8 + $0x48] sm:$0xff]   ;;  %v5311_v48 = vld [vmem:[%s6864_s8 + $0x50] sm:$0xff]  }
 0x33e   :  { %v981_v51 = vrot.slane %v980_v50, 2  ;;  %v993_v56 = vadd.f32 %v992_v55, %v991_v49  ;;  %v5312_v49 = vld [vmem:[%s6864_s8 + $0x58] sm:$0xff]   ;;  %v1999_v55 = vld [vmem:[#allocation13] sm:$0xff] }
 0x340   :  { %v982_v52 = vadd.f32 %v981_v51, %v980_v50  ;;  %v5308_v50 = vld [vmem:[#allocation11 + $0x18] sm:$0xff]  }
 0x341   :  { %v5313_v51 = vld [vmem:[%s6864_s8 + $0x60] sm:$0xff]  }
 0x342   :  { %v983_v53 = vrot.slane %v982_v52, 1 }
 0x344   :  { %v984_v54 = vadd.f32 %v983_v53, %v982_v52  ;;  %v5314_v52 = vld [vmem:[%s6864_s8 + $0x68] sm:$0xff]   ;;  %v5315_v53 = vld [vmem:[%s6864_s8 + $0x70] sm:$0xff]  }
 0x346   :  { %4541 = vmatmul.mubr.f32.vlgmr.msra.gmra.mrb[12].mxu1 %v984_v54  ;;  %v5316_v54 = vld [vmem:[%s6864_s8 + $0x78] sm:$0xff]  }
 0x347   :  { %5084 = vmatpush3.bf16.msra.mxu1 %v6154_v32  ;;  %4575 = vmatprep.mubr.msk.f32.mxu1 %vm5750_vm2, %v5751_v29  ;;  %v994_v32 = vrot.slane %v993_v56, 2 }
 0x348   :  { %5085 = vmatprep.subr.bf16.mxu1 %v5749_v31 }
 0x349   :  { %v995_v57 = vadd.f32 %v994_v32, %v993_v56  ;;  %v2000_v56 = vld [vmem:[#allocation13 + $0x8] sm:$0xff]  ;;  %v2001_v32 = vld [vmem:[#allocation13 + $0x10] sm:$0xff] }
 0x34b   :  { %5087 = vmatpush3.bf16.msra.mxu1 %v6157_v34  ;;  %v996_v34 = vrot.slane %v995_v57, 1 }
 0x34c   :  { %5088 = vmatprep.subr.bf16.mxu1 %v5749_v31 }
 0x34f   :  { %5090 = vmatpush3.bf16.msra.mxu1 %v6161_v37  ;;  %v997_v37 = vadd.f32 %v996_v34, %v995_v57  ;;  %v6338_v57 = vpack.c.bf16 %v2000_v56, %v1999_v55  ;;  %v2002_v34 = vld [vmem:[#allocation13 + $0x18] sm:$0xff]  ;;  %v2011_v56 = vld [vmem:[#allocation13 + $0x60] sm:$0xff] }
 0x350   :  { %5091 = vmatprep.subr.bf16.mxu1 %v5749_v31 }
 0x353   :  { %5093 = vmatpush3.bf16.msra.mxu1 %v5068_v17 }
 0x354   :  { %5094 = vmatprep.subr.bf16.mxu1 %v5749_v31 }
 0x357   :  { %5096 = vmatpush3.bf16.msra.mxu1 %v5071_v20 }
 0x358   :  { %5097 = vmatprep.subr.bf16.mxu1 %v5749_v31 }
 0x35b   :  { %5099 = vmatpush3.bf16.msra.mxu1 %v5074_v23 }
 0x35c   :  { %5100 = vmatprep.subr.bf16.mxu1 %v5749_v31 }
 0x35f   :  { %5102 = vmatpush3.bf16.msra.mxu1 %v5077_v26 }
 0x360   :  { %5103 = vmatprep.subr.bf16.mxu1 %v5749_v31 }
 0x363   :  { %5105 = vmatpush3.bf16.msra.mxu1 %v5080_v30 }
 0x364   :  { %4578 = vmatprep.subr.mxu1 %v5751_v29 }
 0x366   :  { %4576 = vmatmul.mubr.f32.vlgmr.msra.gmra.mrb[14].mxu1 %v997_v37  ;;  %v6341_v37 = vpack.c.bf16 %v2002_v34, %v2001_v32  ;;  %v2012_v32 = vld [vmem:[#allocation13 + $0x68] sm:$0xff] }
 0x367   :  { %4580 = vmatprep.mubr.msk.f32.mxu1 %vm5750_vm2, %v5751_v29  ;;  %4579 = vmatpush3.msra.mxu1 %v1166_v58  ;;  %v5125_v34 = vpack.c.bf16 %v2012_v32, %v2011_v56  ;;  %v2636_v56 = vld [vmem:[#allocation19 + $0x8] sm:$0xf]  ;;  %v2397_v32 = vld [vmem:[#allocation19 + $0x4] sm:$0xf] }
 0x368   :  { %4583 = vmatprep.subr.mxu1 %v5751_v29 }
 0x419   :  { %v1080_v59 = vpop.f32.mrb[12].mxu1 }
 0x41a   :  { %v4542_v60 = vpop.f32.mrb[13].mxu1  ;;  %v1084_v61 = vmul.f32 0.001953125, %v1080_v59  ;;  %v2004_v59 = vld [vmem:[#allocation13 + $0x28] sm:$0xff] }
 0x41c   :  { %v1156_v63 = vmul.f32 %v1084_v61, %v1084_v61 }
 0x439   :  { %v1151_v62 = vpop.f32.mrb[14].mxu1 }
 0x43a   :  { %v1155_v0 = vmul.f32 0.001953125, %v1151_v62  ;;  %v4577_v1 = vpop.f32.mrb[15].mxu1  ;;  %v2006_v62 = vld [vmem:[#allocation13 + $0x38] sm:$0xff] }
 0x43c   :  { %v1157_v2 = vsub.f32 %v1155_v0, %v1156_v63 }
 0x43e   :  { %v1158_v3 = vmax.f32 %v1157_v2, 0.0 }
 0x440   :  { %v1160_v4 = vadd.f32 1e-05, %v1158_v3 }
 0x442   :  { %5397 = vrsqrt.f32 %v1160_v4 }
 0x44c   :  { %v5398_v6 = vpop.eup %5397 }
 0x44d   :  { %v1162_v7 = vmul.f32 %v5398_v6, %v1159_v5  ;;  %v5317_v5 = vld [vmem:[%s6864_s8] sm:$0xff]  }
 0x44f   :  { %4581 = vmatmul.mubr.msk.f32.vlgmr.msra.gmra.mrb[16].mxu1 %vm1167_vm3, %v1162_v7  ;;  %v1164_v9 = vmul.f32 %v1162_v7, %v1084_v61  ;;  %v2005_v61 = vld [vmem:[#allocation13 + $0x30] sm:$0xff] }
 0x450   :  { %4584 = vmatpush3.msra.mxu1 %v1166_v58  ;;  %4585 = vmatprep.mubr.msk.f32.mxu1 %vm5750_vm2, %v5751_v29  ;;  %v2003_v58 = vld [vmem:[#allocation13 + $0x20] sm:$0xff]  ;;  %v6349_v63 = vpack.c.bf16 %v2006_v62, %v2005_v61 }
 0x451   :  { %v1165_v10 = vsub.f32 %v1163_v8, %v1164_v9  ;;  %4588 = vmatprep.subr.bf16.mxu1 %v5751_v29  ;;  %v6345_v60 = vpack.c.bf16 %v2004_v59, %v2003_v58  ;;  %v2013_v58 = vld [vmem:[#allocation13 + $0x70] sm:$0xff]  ;;  %v2014_v59 = vld [vmem:[#allocation13 + $0x78] sm:$0xff] }
 0x452   :  { %v5128_v61 = vpack.c.bf16 %v2014_v59, %v2013_v58  ;;  %v5342_v58 = vld [vmem:[%s6870_s14 + $0x48] sm:$0xff]   ;;  %v5343_v59 = vld [vmem:[%s6870_s14 + $0x50] sm:$0xff]  }
 0x453   :  { %4586 = vmatmul.mubr.msk.f32.vlgmr.msra.gmra.mrb[18].mxu1 %vm1167_vm3, %v1165_v10 }
 0x454   :  { %4592 = vmatprep.mubr.msk.bf16.mxu1 %vm5750_vm2, %v5751_v29 }
 0x522   :  { %v1237_v14 = vpop.f32.mrb[16].mxu1 }
 0x523   :  { %v1317_v15 = vrot.slane %v1237_v14, %v6278_v13  ;;  %v4582_v16 = vpop.f32.mrb[17].mxu1 }
 0x525   :  { %v1318_v17 = vmul.f32 %v1317_v15, %v6237_v35  ;;  %v1319_v18 = vmul.f32 %v1317_v15, %v6241_v38  ;;  %v1320_v19 = vmul.f32 %v6235_v33, %v1317_v15  ;;  %v1321_v20 = vmul.f32 %v6239_v36, %v1317_v15  ;;  %v5319_v15 = vld [vmem:[%s6864_s8 + $0x10] sm:$0xff]  }
 0x526   :  { %v1310_v21 = vpop.f32.mrb[18].mxu1 }
 0x527   :  { %v1325_v22 = vrot.slane %v1310_v21, %v6278_v13  ;;  %v4587_v23 = vpop.f32.mrb[19].mxu1 }
 0x529   :  { %v1326_v24 = vadd.f32 %v1325_v22, %v1318_v17  ;;  %v1327_v25 = vadd.f32 %v1325_v22, %v1319_v18  ;;  %v1328_v26 = vadd.f32 %v1325_v22, %v1320_v19  ;;  %v1329_v27 = vadd.f32 %v1325_v22, %v1321_v20  ;;  %v5320_v19 = vld [vmem:[%s6864_s8 + $0x18] sm:$0xff]   ;;  %v5321_v22 = vld [vmem:[%s6864_s8 + $0x20] sm:$0xff]  }
 0x52b   :  { %vm1330_vm4 = vcmp.ge.f32.partialorder %v1326_v24, 0.0  ;;  %vm1331_vm5 = vcmp.ge.f32.partialorder %v1327_v25, 0.0  ;;  %v1334_v28 = vmul.f32 0.2, %v1326_v24  ;;  %v1335_v30 = vmul.f32 0.2, %v1327_v25 }
 0x52c   :  { %vm1332_vm6 = vcmp.ge.f32.partialorder %v1328_v26, 0.0  ;;  %vm1333_vm7 = vcmp.ge.f32.partialorder %v1329_v27, 0.0  ;;  %v1336_v35 = vmul.f32 0.2, %v1328_v26  ;;  %v1337_v38 = vmul.f32 0.2, %v1329_v27 }
 0x52d   :  { %v1338_v39 = vsel %vm1330_vm4, %v1326_v24, %v1334_v28  ;;  %v1339_v33 = vsel %vm1331_vm5, %v1327_v25, %v1335_v30  ;;  %v5324_v28 = vld [vmem:[%s6864_s8 + $0x38] sm:$0xff]   ;;  %v5325_v30 = vld [vmem:[%s6864_s8 + $0x80] sm:$0xff]  }
 0x52e   :  { %v1342_v40 = vpack.c.bf16 %v1339_v33, %v1338_v39  ;;  %v1340_v36 = vsel %vm1332_vm6, %v1328_v26, %v1336_v35  ;;  %v1341_v41 = vsel %vm1333_vm7, %v1329_v27, %v1337_v38  ;;  %v5322_v26 = vld [vmem:[%s6864_s8 + $0x28] sm:$0xff]   ;;  %v5323_v27 = vld [vmem:[%s6864_s8 + $0x30] sm:$0xff]   ;;  %v5328_v39 = vld [vmem:[%s6864_s8 + $0x98] sm:$0xff]  }
 0x52f   :  { %v1343_v42 = vpack.c.bf16 %v1341_v41, %v1340_v36  ;;  %v5326_v35 = vld [vmem:[%s6864_s8 + $0x88] sm:$0xff]   ;;  %v5327_v38 = vld [vmem:[%s6864_s8 + $0x90] sm:$0xff]   ;;  %v5329_v33 = vld [vmem:[%s6864_s8 + $0xa0] sm:$0xff]  }
 0x530   :  { %4589 = vmatpush3.bf16.msra.mxu1 %v1342_v40  ;;  %4597 = vmatpush3.bf16.msra.mxu0 %v1342_v40  ;;  %v5331_v36 = vld [vmem:[%s6864_s8 + $0xb0] sm:$0xff]   ;;  %v5332_v41 = vld [vmem:[%s6864_s8 + $0xb8] sm:$0xff]  }
 0x531   :  { %4590 = vmatprep.subr.bf16.mxu1 %v5751_v29  ;;  %4598 = vmatprep.subr.bf16.mxu0 %v5751_v29 }
 0x534   :  { %4591 = vmatpush3.bf16.msra.mxu1 %v1343_v42  ;;  %4599 = vmatpush3.bf16.msra.mxu0 %v1343_v42 }
 0x535   :  { %4644 = vmatprep.subr.bf16.mxu0 %v5751_v29  ;;  %4604 = vmatprep.subr.bf16.mxu1 %v5751_v29 }
 0x537   :  { %4601 = vmatmul.mubr.msk.bf16.vlgmr.msra.gmra.mrb[8].mxu0 %vm1351_vm8, %v5305_v43  ;;  %4593 = vmatmul.mubr.msk.bf16.vlgmr.msra.gmra.mrb[20].mxu1 %vm1351_vm8, %v5307_v44  ;;  %v5334_v43 = vld [vmem:[%s6864_s8 + $0xc8] sm:$0xff]   ;;  %v5335_v44 = vld [vmem:[%s6864_s8 + $0xd0] sm:$0xff]  }
 0x538   :  { %4645 = vmatpush3.bf16.msra.mxu0 %v1342_v40  ;;  %4648 = vmatprep.mubr.msk.bf16.mxu0 %vm5750_vm2, %v5751_v29 }
 0x539   :  { %4646 = vmatprep.subr.bf16.mxu0 %v5751_v29  ;;  %4605 = vmatpush3.bf16.msra.mxu1 %v5309_v45  ;;  %v5336_v45 = vld [vmem:[%s6864_s8 + $0xd8] sm:$0xff]  }
 0x53a   :  { %4606 = vmatprep.subr.bf16.mxu1 %v5751_v29  ;;  %4620 = vmatprep.mubr.msk.bf16.mxu1 %vm5750_vm2, %v5751_v29 }
 0x53c   :  { %4647 = vmatpush3.bf16.msra.mxu0 %v1343_v42 }
 0x53d   :  { %4672 = vmatprep.subr.bf16.mxu0 %v5751_v29  ;;  %4607 = vmatpush3.bf16.msra.mxu1 %v5310_v46  ;;  %v5337_v46 = vld [vmem:[%s6864_s8 + $0xe0] sm:$0xff]  }
 0x53e   :  { %4608 = vmatprep.subr.bf16.mxu1 %v5751_v29 }
 0x53f   :  { %4649 = vmatmul.mubr.msk.bf16.vlgmr.msra.gmra.mrb[12].mxu0 %vm1351_vm8, %v5306_v47  ;;  %v5338_v47 = vld [vmem:[%s6864_s8 + $0xe8] sm:$0xff]  }
 0x540   :  { %4673 = vmatpush3.bf16.msra.mxu0 %v1342_v40  ;;  %4676 = vmatprep.mubr.msk.bf16.mxu0 %vm5750_vm2, %v5751_v29  ;;  %v5330_v40 = vld [vmem:[%s6864_s8 + $0xa8] sm:$0xff]  }
 0x541   :  { %4674 = vmatprep.subr.bf16.mxu0 %v5751_v29  ;;  %4609 = vmatpush3.bf16.msra.mxu1 %v5311_v48  ;;  %v5339_v48 = vld [vmem:[%s6864_s8 + $0xf0] sm:$0xff]  }
 0x542   :  { %4610 = vmatprep.subr.bf16.mxu1 %v5751_v29 }
 0x544   :  { %4675 = vmatpush3.bf16.msra.mxu0 %v1343_v42  ;;  %v5333_v42 = vld [vmem:[%s6864_s8 + $0xc0] sm:$0xff]  }
 0x545   :  { %4611 = vmatpush3.bf16.msra.mxu1 %v5312_v49  ;;  %5106 = vmatprep.subr.bf16.mxu0 %v5749_v31  ;;  %v5340_v49 = vld [vmem:[%s6864_s8 + $0xf8] sm:$0xff]  }
 0x546   :  { %4612 = vmatprep.subr.bf16.mxu1 %v5751_v29 }
 0x547   :  { %4677 = vmatmul.mubr.msk.bf16.vlgmr.msra.gmra.mrb[16].mxu0 %vm1351_vm8, %v5308_v50  ;;  %v2007_v50 = vld [vmem:[#allocation13 + $0x40] sm:$0xff] }
 0x548   :  { %4732 = vmatprep.mubr.msk.f32.mxu0 %vm5750_vm2, %v5751_v29  ;;  %5108 = vmatpush3.bf16.msra.mxu0 %v6338_v57 }
 0x549   :  { %4613 = vmatpush3.bf16.msra.mxu1 %v5313_v51  ;;  %5109 = vmatprep.subr.bf16.mxu0 %v5749_v31  ;;  %v2008_v51 = vld [vmem:[#allocation13 + $0x48] sm:$0xff] }
 0x54a   :  { %4614 = vmatprep.subr.bf16.mxu1 %v5751_v29 }
 0x54c   :  { %5111 = vmatpush3.bf16.msra.mxu0 %v6341_v37 }
 0x54d   :  { %4615 = vmatpush3.bf16.msra.mxu1 %v5314_v52  ;;  %5112 = vmatprep.subr.bf16.mxu0 %v5749_v31  ;;  %v5119_v52 = vpack.c.bf16 %v2008_v51, %v2007_v50 }
 0x54e   :  { %4616 = vmatprep.subr.bf16.mxu1 %v5751_v29 }
 0x550   :  { %5114 = vmatpush3.bf16.msra.mxu0 %v6345_v60 }
 0x551   :  { %4617 = vmatpush3.bf16.msra.mxu1 %v5315_v53  ;;  %5115 = vmatprep.subr.bf16.mxu0 %v5749_v31  ;;  %v2009_v53 = vld [vmem:[#allocation13 + $0x50] sm:$0xff] }
 0x552   :  { %4618 = vmatprep.subr.bf16.mxu1 %v5751_v29 }
 0x554   :  { %5117 = vmatpush3.bf16.msra.mxu0 %v6349_v63 }
 0x555   :  { %4619 = vmatpush3.bf16.msra.mxu1 %v5316_v54  ;;  %5118 = vmatprep.subr.bf16.mxu0 %v5749_v31  ;;  %v2010_v54 = vld [vmem:[#allocation13 + $0x58] sm:$0xff] }
 0x556   :  { %4624 = vmatprep.subr.bf16.mxu1 %v5751_v29  ;;  %v5122_v55 = vpack.c.bf16 %v2010_v54, %v2009_v53 }
 0x558   :  { %5120 = vmatpush3.bf16.msra.mxu0 %v5119_v52 }
 0x559   :  { %5121 = vmatprep.subr.bf16.mxu0 %v5749_v31 }
 0x55c   :  { %5123 = vmatpush3.bf16.msra.mxu0 %v5122_v55 }
 0x55d   :  { %5124 = vmatprep.subr.bf16.mxu0 %v5749_v31 }
 0x560   :  { %5126 = vmatpush3.bf16.msra.mxu0 %v5125_v34 }
 0x561   :  { %5127 = vmatprep.subr.bf16.mxu0 %v5749_v31 }
 0x564   :  { %5129 = vmatpush3.bf16.msra.mxu0 %v5128_v61 }
 0x565   :  { %5130 = vmatprep.subr.bf16.mxu0 %v5749_v31 }
 0x60a   :  { %v1458_v0 = vpop.f32.mrb[8].mxu0  ;;  %v1389_v1 = vpop.f32.mrb[20].mxu1 }
 0x60b   :  { %v4602_v2 = vpop.f32.mrb[9].mxu0  ;;  %v4594_v3 = vpop.f32.mrb[21].mxu1 }
 0x60c   :  { %v1461_v4 = vpop.f32.mrb[10].mxu0  ;;  %v1392_v6 = vpop.f32.mrb[22].mxu1 }
 0x60d   :  { %v1465_v7 = vpack.c.bf16 %v1461_v4, %v1458_v0  ;;  %v4603_v8 = vpop.f32.mrb[11].mxu0  ;;  %v1396_v9 = vpack.c.bf16 %v1392_v6, %v1389_v1  ;;  %v4595_v10 = vpop.f32.mrb[23].mxu1 }
 0x60f   :  { %4621 = vmatmul.mubr.bf16.vlgmr.msra.gmra.mrb[24].mxu1 %v1465_v7 }
 0x610   :  { %4625 = vmatpush3.bf16.msra.mxu1 %v5317_v5  ;;  %4640 = vmatprep.mubr.msk.bf16.mxu1 %vm5750_vm2, %v5751_v29 }
 0x611   :  { %4626 = vmatprep.subr.bf16.mxu1 %v5751_v29 }
 0x612   :  { %v1706_v12 = vpop.f32.mrb[12].mxu0 }
 0x613   :  { %v4650_v14 = vpop.f32.mrb[13].mxu0 }
 0x614   :  { %4627 = vmatpush3.bf16.msra.mxu1 %v5318_v11  ;;  %v1709_v16 = vpop.f32.mrb[14].mxu0 }
 0x615   :  { %4628 = vmatprep.subr.bf16.mxu1 %v5751_v29  ;;  %v1713_v17 = vpack.c.bf16 %v1709_v16, %v1706_v12  ;;  %v4651_v18 = vpop.f32.mrb[15].mxu0 }
 0x618   :  { %4629 = vmatpush3.bf16.msra.mxu1 %v5319_v15 }
 0x619   :  { %4630 = vmatprep.subr.bf16.mxu1 %v5751_v29 }
 0x61a   :  { %v6371_v20 = vpop.f32.mrb[16].mxu0 }
 0x61b   :  { %v4678_v21 = vpop.f32.mrb[17].mxu0 }
 0x61c   :  { %4631 = vmatpush3.bf16.msra.mxu1 %v5320_v19  ;;  %v6376_v23 = vpop.f32.mrb[18].mxu0 }
 0x61d   :  { %4632 = vmatprep.subr.bf16.mxu1 %v5751_v29  ;;  %v1874_v24 = vpack.c.bf16 %v6376_v23, %v6371_v20  ;;  %v4679_v25 = vpop.f32.mrb[19].mxu0 }
 0x620   :  { %4633 = vmatpush3.bf16.msra.mxu1 %v5321_v22 }
 0x621   :  { %4634 = vmatprep.subr.bf16.mxu1 %v5751_v29 }
 0x624   :  { %4635 = vmatpush3.bf16.msra.mxu1 %v5322_v26 }
 0x625   :  { %4636 = vmatprep.subr.bf16.mxu1 %v5751_v29 }
 0x628   :  { %4637 = vmatpush3.bf16.msra.mxu1 %v5323_v27 }
 0x629   :  { %4638 = vmatprep.subr.bf16.mxu1 %v5751_v29 }
 0x62c   :  { %4639 = vmatpush3.bf16.msra.mxu1 %v5324_v28 }
 0x62d   :  { %4652 = vmatprep.subr.bf16.mxu1 %v5751_v29 }
 0x62f   :  { %4641 = vmatmul.mubr.bf16.vlgmr.msra.gmra.mrb[24].mxu1 %v1396_v9 }
 0x630   :  { %4653 = vmatpush3.bf16.msra.mxu1 %v5325_v30  ;;  %4668 = vmatprep.mubr.msk.bf16.mxu1 %vm5750_vm2, %v5751_v29  ;;  %v2160_v30 = vld [vmem:[#allocation16] sm:$0x1] }
 0x631   :  { %4654 = vmatprep.subr.bf16.mxu1 %v5751_v29 }
 0x634   :  { %4655 = vmatpush3.bf16.msra.mxu1 %v5326_v35 }
 0x635   :  { %4656 = vmatprep.subr.bf16.mxu1 %v5751_v29 }
 0x638   :  { %4657 = vmatpush3.bf16.msra.mxu1 %v5327_v38 }
 0x639   :  { %4658 = vmatprep.subr.bf16.mxu1 %v5751_v29 }
 0x63c   :  { %4659 = vmatpush3.bf16.msra.mxu1 %v5328_v39  ;;  %v2164_v39 = vld [vmem:[#allocation17] sm:$0x1] }
 0x63d   :  { %4660 = vmatprep.subr.bf16.mxu1 %v5751_v29 }
 0x640   :  { %4661 = vmatpush3.bf16.msra.mxu1 %v5329_v33 }
 0x641   :  { %4662 = vmatprep.subr.bf16.mxu1 %v5751_v29 }
 0x644   :  { %4663 = vmatpush3.bf16.msra.mxu1 %v5330_v40 }
 0x645   :  { %4664 = vmatprep.subr.bf16.mxu1 %v5751_v29 }
 0x648   :  { %4665 = vmatpush3.bf16.msra.mxu1 %v5331_v36 }
 0x649   :  { %4666 = vmatprep.subr.bf16.mxu1 %v5751_v29 }
 0x64c   :  { %4667 = vmatpush3.bf16.msra.mxu1 %v5332_v41 }
 0x64d   :  { %4680 = vmatprep.subr.bf16.mxu1 %v5751_v29 }
 0x64f   :  { %4669 = vmatmul.mubr.bf16.vlgmr.msra.gmra.mrb[24].mxu1 %v1713_v17  ;;  %v2168_v17 = vld [vmem:[#allocation14 + $0x8] sm:$0xff] }
 0x650   :  { %4681 = vmatpush3.bf16.msra.mxu1 %v5333_v42  ;;  %4696 = vmatprep.mubr.msk.bf16.mxu1 %vm5750_vm2, %v5751_v29 }
 0x651   :  { %4682 = vmatprep.subr.bf16.mxu1 %v5751_v29 }
 0x654   :  { %4683 = vmatpush3.bf16.msra.mxu1 %v5334_v43 }
 0x655   :  { %4684 = vmatprep.subr.bf16.mxu1 %v5751_v29 }
 0x658   :  { %4685 = vmatpush3.bf16.msra.mxu1 %v5335_v44 }
 0x659   :  { %4686 = vmatprep.subr.bf16.mxu1 %v5751_v29 }
 0x65c   :  { %4687 = vmatpush3.bf16.msra.mxu1 %v5336_v45 }
 0x65d   :  { %4688 = vmatprep.subr.bf16.mxu1 %v5751_v29 }
 0x660   :  { %4689 = vmatpush3.bf16.msra.mxu1 %v5337_v46 }
 0x661   :  { %4690 = vmatprep.subr.bf16.mxu1 %v5751_v29 }
 0x664   :  { %4691 = vmatpush3.bf16.msra.mxu1 %v5338_v47 }
 0x665   :  { %4692 = vmatprep.subr.bf16.mxu1 %v5751_v29 }
 0x668   :  { %4693 = vmatpush3.bf16.msra.mxu1 %v5339_v48 }
 0x669   :  { %4694 = vmatprep.subr.bf16.mxu1 %v5751_v29 }
 0x66c   :  { %4695 = vmatpush3.bf16.msra.mxu1 %v5340_v49 }
 0x66d   :  { %4836 = vmatprep.subr.bf16.mxu1 %v5751_v29 }
 0x66f   :  { %4697 = vmatmul.mubr.bf16.vlgmr.msra.gmra.mrb[24].mxu1 %v1874_v24 }
 0x670   :  { %4838 = vmatprep.mubr.msk.bf16.mxu1 %vm5750_vm2, %v5751_v29 }
 0x742   :  { %v6471_v62 = vpop.f32.mrb[24].mxu1 }
 0x743   :  { %v4698_v0 = vpop.f32.mrb[25].mxu1  ;;  %v1990_v2 = vmul.f32 %v6471_v62, %v6471_v62 }
 0x744   :  { %v6473_v1 = vpop.f32.mrb[26].mxu1  ;;  %v5346_v0 = vld [vmem:[%s6870_s14 + $0x68] sm:$0xff]  }
 0x745   :  { %v1983_v3 = vadd.f32 %v6473_v1, %v6471_v62  ;;  %v1991_v4 = vmul.f32 %v6473_v1, %v6473_v1  ;;  %v4699_v5 = vpop.f32.mrb[27].mxu1 }
 0x746   :  { %v2802_v5 = vld [vmem:[#allocation20 + $0x10] sm:$0xff] }
 0x747   :  { %v1984_v6 = vrot.slane %v1983_v3, 4  ;;  %v1992_v7 = vadd.f32 %v1991_v4, %v1990_v2  ;;  %v5348_v2 = vld [vmem:[%s6870_s14 + $0x78] sm:$0xff]  }
 0x748   :  { %v2801_v4 = vld [vmem:[#allocation20 + $0x8] sm:$0xff] }
 0x749   :  { %v1985_v8 = vadd.f32 %v1984_v6, %v1983_v3  ;;  %v1993_v14 = vrot.slane %v1992_v7, 4  ;;  %v2800_v3 = vld [vmem:[#allocation20] sm:$0xff] }
 0x74a   :  { %v6553_v6 = vpack.c.bf16 %v2801_v4, %v2800_v3 }
 0x74b   :  { %v1986_v9 = vrot.slane %v1985_v8, 2  ;;  %v1994_v15 = vadd.f32 %v1993_v14, %v1992_v7  ;;  %v2803_v7 = vld [vmem:[#allocation20 + $0x18] sm:$0xff] }
 0x74c   :  { %v2807_v14 = vld [vmem:[#allocation20 + $0x38] sm:$0xff] }
 0x74d   :  { %v1987_v10 = vadd.f32 %v1986_v9, %v1985_v8  ;;  %v6556_v8 = vpack.c.bf16 %v2803_v7, %v2802_v5  ;;  %v2804_v9 = vld [vmem:[#allocation20 + $0x20] sm:$0xff] }
 0x74f   :  { %v1988_v11 = vrot.slane %v1987_v10, 1 }
 0x751   :  { %v1989_v12 = vadd.f32 %v1988_v11, %v1987_v10  ;;  %v2805_v10 = vld [vmem:[#allocation20 + $0x28] sm:$0xff] }
 0x752   :  { %v6560_v11 = vpack.c.bf16 %v2805_v10, %v2804_v9 }
 0x753   :  { %4733 = vmatmul.mubr.f32.vlgmr.msra.gmra.mrb[20].mxu0 %v1989_v12  ;;  %v2806_v12 = vld [vmem:[#allocation20 + $0x30] sm:$0xff] }
 0x754   :  { %5132 = vmatpush3.bf16.msra.mxu0 %v6338_v57  ;;  %4767 = vmatprep.mubr.msk.f32.mxu0 %vm5750_vm2, %v5751_v29  ;;  %v1995_v57 = vrot.slane %v1994_v15, 2 }
 0x755   :  { %5133 = vmatprep.subr.bf16.mxu0 %v5749_v31 }
 0x758   :  { %5135 = vmatpush3.bf16.msra.mxu0 %v6341_v37  ;;  %v1996_v37 = vadd.f32 %v1995_v57, %v1994_v15  ;;  %v6564_v15 = vpack.c.bf16 %v2807_v14, %v2806_v12  ;;  %v2808_v57 = vld [vmem:[#allocation20 + $0x40] sm:$0xff] }
 0x759   :  { %5136 = vmatprep.subr.bf16.mxu0 %v5749_v31 }
 0x75c   :  { %5138 = vmatpush3.bf16.msra.mxu0 %v6345_v60  ;;  %v1997_v60 = vrot.slane %v1996_v37, 1 }
 0x75d   :  { %5139 = vmatprep.subr.bf16.mxu0 %v5749_v31 }
 0x75e   :  { %v1998_v16 = vadd.f32 %v1997_v60, %v1996_v37  ;;  %v2809_v37 = vld [vmem:[#allocation20 + $0x48] sm:$0xff] }
 0x75f   :  { %v6568_v60 = vpack.c.bf16 %v2809_v37, %v2808_v57  ;;  %v2969_v57 = vld [vmem:[#allocation22 + $0x8] sm:$0xff]  ;;  %v2970_v37 = vld [vmem:[#allocation22 + $0x10] sm:$0xff] }
 0x760   :  { %5141 = vmatpush3.bf16.msra.mxu0 %v6349_v63  ;;  %v2167_v63 = vld [vmem:[#allocation14] sm:$0xff] }
 0x761   :  { %5142 = vmatprep.subr.bf16.mxu0 %v5749_v31  ;;  %v5155_v18 = vpack.c.bf16 %v2168_v17, %v2167_v63 }
 0x764   :  { %5144 = vmatpush3.bf16.msra.mxu0 %v5119_v52 }
 0x765   :  { %5145 = vmatprep.subr.bf16.mxu0 %v5749_v31 }
 0x768   :  { %5147 = vmatpush3.bf16.msra.mxu0 %v5122_v55  ;;  %v2335_v55 = vld [vmem:[#allocation19] sm:$0xf] }
 0x769   :  { %5148 = vmatprep.subr.bf16.mxu0 %v5749_v31 }
 0x76c   :  { %5150 = vmatpush3.bf16.msra.mxu0 %v5125_v34  ;;  %v5341_v34 = vld [vmem:[%s6870_s14 + $0x40] sm:$0xff]  }
 0x76d   :  { %5151 = vmatprep.subr.bf16.mxu0 %v5749_v31 }
 0x770   :  { %5153 = vmatpush3.bf16.msra.mxu0 %v5128_v61  ;;  %v5344_v61 = vld [vmem:[%s6870_s14 + $0x58] sm:$0xff]  }
 0x771   :  { %5154 = vmatprep.subr.bf16.mxu0 %v5749_v31 }
 0x773   :  { %4768 = vmatmul.mubr.f32.vlgmr.msra.gmra.mrb[22].mxu0 %v1998_v16 }
 0x774   :  { %4774 = vmatprep.mubr.msk.f32.mxu0 %vm5750_vm2, %v5751_v29  ;;  %5156 = vmatpush3.bf16.msra.mxu0 %v5155_v18 }
 0x775   :  { %5157 = vmatprep.subr.bf16.mxu0 %v5749_v31 }
 0x826   :  { %v2081_v19 = vpop.f32.mrb[20].mxu0 }
 0x827   :  { %v4734_v20 = vpop.f32.mrb[21].mxu0  ;;  %v2085_v21 = vmul.f32 0.0078125, %v2081_v19 }
 0x829   :  { %v2157_v23 = vmul.f32 %v2085_v21, %v2085_v21 }
 0x846   :  { %v2152_v22 = vpop.f32.mrb[22].mxu0 }
 0x847   :  { %v2156_v24 = vmul.f32 0.0078125, %v2152_v22  ;;  %v4769_v25 = vpop.f32.mrb[23].mxu0 }
 0x849   :  { %v2158_v26 = vsub.f32 %v2156_v24, %v2157_v23  ;;  %v5349_v24 = vld [vmem:[%s6870_s14] sm:$0xff]  }
 0x84b   :  { %v2159_v27 = vmax.f32 %v2158_v26, 0.0 }
 0x84d   :  { %v2161_v28 = vadd.f32 1e-05, %v2159_v27 }
 0x84f   :  { %5399 = vrsqrt.f32 %v2161_v28 }
 0x859   :  { %v5400_v35 = vpop.eup %5399 }
 0x85a   :  { %v2163_v38 = vmul.f32 %v5400_v35, %v2160_v30  ;;  %v5350_v30 = vld [vmem:[%s6870_s14 + $0x8] sm:$0xff]   ;;  %v5351_v35 = vld [vmem:[%s6870_s14 + $0x10] sm:$0xff]  }
 0x85c   :  { %4775 = vmatmul.mubr.msk.f32.vlgmr.msra.gmra.mrb[24].mxu0 %vm2169_vm9, %v2163_v38  ;;  %v2165_v33 = vmul.f32 %v2163_v38, %v2085_v21  ;;  %v5352_v38 = vld [vmem:[%s6870_s14 + $0x18] sm:$0xff]  }
 0x85d   :  { %5159 = vmatpush3.bf16.msra.mxu0 %v5155_v18  ;;  %4781 = vmatprep.mubr.msk.f32.mxu0 %vm5750_vm2, %v5751_v29 }
 0x85e   :  { %v2166_v40 = vsub.f32 %v2164_v39, %v2165_v33  ;;  %4784 = vmatprep.subr.bf16.mxu0 %v5751_v29  ;;  %v5353_v39 = vld [vmem:[%s6870_s14 + $0x20] sm:$0xff]   ;;  %v5354_v33 = vld [vmem:[%s6870_s14 + $0x28] sm:$0xff]  }
 0x860   :  { %4782 = vmatmul.mubr.msk.f32.vlgmr.msra.gmra.mrb[26].mxu0 %vm2169_vm9, %v2166_v40  ;;  %v5355_v40 = vld [vmem:[%s6870_s14 + $0x30] sm:$0xff]  }
 0x861   :  { %4786 = vmatprep.mubr.msk.bf16.mxu0 %vm5750_vm2, %v5751_v29 }
 0x92f   :  { %v2239_v36 = vpop.f32.mrb[24].mxu0 }
 0x930   :  { %v2319_v41 = vrot.slane %v2239_v36, %v6278_v13  ;;  %v4776_v42 = vpop.f32.mrb[25].mxu0  ;;  %v5356_v36 = vld [vmem:[%s6870_s14 + $0x38] sm:$0xff]  }
 0x932   :  { %v2320_v43 = vmul.f32 %v2319_v41, %v6471_v62  ;;  %v2321_v44 = vmul.f32 %v2319_v41, %v6473_v1  ;;  %v5345_v62 = vld [vmem:[%s6870_s14 + $0x60] sm:$0xff]   ;;  %v5347_v1 = vld [vmem:[%s6870_s14 + $0x70] sm:$0xff]  }
 0x933   :  { %v2312_v45 = vpop.f32.mrb[26].mxu0  ;;  %v5357_v41 = vld [vmem:[%s6870_s14 + $0x80] sm:$0xff]  }
 0x934   :  { %v2325_v46 = vrot.slane %v2312_v45, %v6278_v13  ;;  %v4783_v47 = vpop.f32.mrb[27].mxu0  ;;  %v5360_v45 = vld [vmem:[%s6870_s14 + $0x98] sm:$0xff]  }
 0x935   :  { %v5362_v47 = vld [vmem:[%s6870_s14 + $0xa8] sm:$0xff]  }
 0x936   :  { %v2326_v48 = vadd.f32 %v2325_v46, %v2320_v43  ;;  %v2327_v49 = vadd.f32 %v2325_v46, %v2321_v44  ;;  %v5358_v43 = vld [vmem:[%s6870_s14 + $0x88] sm:$0xff]   ;;  %v5359_v44 = vld [vmem:[%s6870_s14 + $0x90] sm:$0xff]   ;;  %v5361_v46 = vld [vmem:[%s6870_s14 + $0xa0] sm:$0xff]  }
 0x938   :  { %vm2328_vm10 = vcmp.ge.f32.partialorder %v2326_v48, 0.0  ;;  %vm2329_vm11 = vcmp.ge.f32.partialorder %v2327_v49, 0.0  ;;  %v2330_v50 = vmul.f32 0.2, %v2326_v48  ;;  %v2331_v51 = vmul.f32 0.2, %v2327_v49 }
 0x93a   :  { %v2332_v52 = vsel %vm2328_vm10, %v2326_v48, %v2330_v50  ;;  %v2333_v53 = vsel %vm2329_vm11, %v2327_v49, %v2331_v51  ;;  %v5363_v48 = vld [vmem:[%s6870_s14 + $0xb0] sm:$0xff]   ;;  %v5364_v49 = vld [vmem:[%s6870_s14 + $0xb8] sm:$0xff]  }
 0x93b   :  { %v2334_v54 = vpack.c.bf16 %v2333_v53, %v2332_v52  ;;  %v2810_v51 = vld [vmem:[#allocation20 + $0x50] sm:$0xff]  ;;  %v2811_v52 = vld [vmem:[#allocation20 + $0x58] sm:$0xff] }
 0x93c   :  { %v5176_v53 = vpack.c.bf16 %v2811_v52, %v2810_v51  ;;  %v5366_v51 = vld [vmem:[%s6876_s20] sm:$0xff]   ;;  %v5367_v52 = vld [vmem:[%s6876_s20 + $0x48] sm:$0xff]  }
 0x93d   :  { %4785 = vmatpush3.bf16.msra.mxu0 %v2334_v54  ;;  %4837 = vmatpush3.bf16.msra.mxu1 %v2334_v54 }
 0x93e   :  { %4790 = vmatprep.subr.bf16.mxu0 %v5751_v29  ;;  %5160 = vmatprep.subr.bf16.mxu1 %v5749_v31 }
 0x940   :  { %4787 = vmatmul.mubr.msk.bf16.vlgmr.msra.gmra.mrb[28].mxu0 %vm2169_vm9, %v2335_v55  ;;  %4839 = vmatmul.mubr.msk.bf16.vlgmr.msra.gmra.mrb[28].mxu1 %vm2169_vm9, %v2636_v56  ;;  %v2813_v55 = vld [vmem:[#allocation20 + $0x68] sm:$0xff] }
 0x941   :  { %4791 = vmatpush3.bf16.msra.mxu0 %v2334_v54  ;;  %4792 = vmatprep.mubr.msk.bf16.mxu0 %vm5750_vm2, %v5751_v29  ;;  %v2812_v54 = vld [vmem:[#allocation20 + $0x60] sm:$0xff] }
 0x942   :  { %4796 = vmatprep.subr.bf16.mxu0 %v5751_v29  ;;  %4894 = vmatprep.mubr.msk.f32.mxu1 %vm5750_vm2, %v5751_v29  ;;  %v5179_v56 = vpack.c.bf16 %v2813_v55, %v2812_v54  ;;  %v5369_v54 = vld [vmem:[%s6876_s20 + $0x50] sm:$0xff]  }
 0x943   :  { %5162 = vmatpush3.bf16.msra.mxu1 %v6553_v6  ;;  %v5370_v55 = vld [vmem:[%s6876_s20 + $0x10] sm:$0xff]  }
 0x944   :  { %5163 = vmatprep.subr.bf16.mxu1 %v5749_v31 }
 0x947   :  { %5165 = vmatpush3.bf16.msra.mxu1 %v6556_v8 }
 0x948   :  { %4793 = vmatmul.mubr.msk.bf16.vlgmr.msra.gmra.mrb[32].mxu0 %vm2169_vm9, %v2397_v32  ;;  %5166 = vmatprep.subr.bf16.mxu1 %v5749_v31  ;;  %v2814_v32 = vld [vmem:[#allocation20 + $0x70] sm:$0xff] }
 0x949   :  { %4797 = vmatpush3.bf16.msra.mxu0 %v5341_v34  ;;  %4812 = vmatprep.mubr.msk.bf16.mxu0 %vm5750_vm2, %v5751_v29  ;;  %v2815_v34 = vld [vmem:[#allocation20 + $0x78] sm:$0xff] }
 0x94a   :  { %4798 = vmatprep.subr.bf16.mxu0 %v5751_v29 }
 0x94b   :  { %5168 = vmatpush3.bf16.msra.mxu1 %v6560_v11 }
 0x94c   :  { %5169 = vmatprep.subr.bf16.mxu1 %v5749_v31 }
 0x94d   :  { %4799 = vmatpush3.bf16.msra.mxu0 %v5342_v58  ;;  %v5182_v58 = vpack.c.bf16 %v2815_v34, %v2814_v32  ;;  %v5372_v32 = vld [vmem:[%s6876_s20 + $0x18] sm:$0xff]   ;;  %v5373_v34 = vld [vmem:[%s6876_s20 + $0x60] sm:$0xff]  }
 0x94e   :  { %4800 = vmatprep.subr.bf16.mxu0 %v5751_v29 }
 0x94f   :  { %5171 = vmatpush3.bf16.msra.mxu1 %v6564_v15 }
 0x950   :  { %5172 = vmatprep.subr.bf16.mxu1 %v5749_v31 }
 0x951   :  { %4801 = vmatpush3.bf16.msra.mxu0 %v5343_v59 }
 0x952   :  { %4802 = vmatprep.subr.bf16.mxu0 %v5751_v29 }
 0x953   :  { %5174 = vmatpush3.bf16.msra.mxu1 %v6568_v60 }
 0x954   :  { %5175 = vmatprep.subr.bf16.mxu1 %v5749_v31 }
 0x955   :  { %4803 = vmatpush3.bf16.msra.mxu0 %v5344_v61 }
 0x956   :  { %4804 = vmatprep.subr.bf16.mxu0 %v5751_v29 }
 0x957   :  { %5177 = vmatpush3.bf16.msra.mxu1 %v5176_v53 }
 0x958   :  { %5178 = vmatprep.subr.bf16.mxu1 %v5749_v31 }
 0x959   :  { %4805 = vmatpush3.bf16.msra.mxu0 %v5345_v62 }
 0x95a   :  { %4806 = vmatprep.subr.bf16.mxu0 %v5751_v29 }
 0x95b   :  { %5180 = vmatpush3.bf16.msra.mxu1 %v5179_v56 }
 0x95c   :  { %5181 = vmatprep.subr.bf16.mxu1 %v5749_v31 }
 0x95d   :  { %4807 = vmatpush3.bf16.msra.mxu0 %v5346_v0 }
 0x95e   :  { %4808 = vmatprep.subr.bf16.mxu0 %v5751_v29 }
 0x95f   :  { %5183 = vmatpush3.bf16.msra.mxu1 %v5182_v58 }
 0x960   :  { %5184 = vmatprep.subr.bf16.mxu1 %v5749_v31 }
 0x961   :  { %4809 = vmatpush3.bf16.msra.mxu0 %v5347_v1 }
 0x962   :  { %4810 = vmatprep.subr.bf16.mxu0 %v5751_v29 }
 0x965   :  { %4811 = vmatpush3.bf16.msra.mxu0 %v5348_v2 }
 0x966   :  { %4816 = vmatprep.subr.bf16.mxu0 %v5751_v29 }
 0xa13   :  { %v2373_v16 = vpop.f32.mrb[28].mxu0  ;;  %v6573_v63 = vpop.f32.mrb[28].mxu1 }
 0xa14   :  { %v4788_v17 = vpop.f32.mrb[29].mxu0  ;;  %v4840_v18 = vpop.f32.mrb[29].mxu1  ;;  %v2379_v42 = vpack.c.bf16 %v2373_v16, %v2373_v16  ;;  %v2680_v50 = vpack.c.bf16 %v6573_v63, %v6573_v63  ;;  %v2971_v16 = vld [vmem:[#allocation22 + $0x18] sm:$0xff] }
 0xa15   :  { %v2376_v19 = vpop.f32.mrb[30].mxu0  ;;  %v2677_v20 = vpop.f32.mrb[30].mxu1  ;;  %v5212_v63 = vpack.c.bf16 %v2971_v16, %v2970_v37  ;;  %v5383_v37 = vld [vmem:[%s6876_s20 + $0x90] sm:$0xff]   ;;  %v4066_v16 = vld [vmem:[%s6875_s19 + $0x3] sm:$0x1] }
 0xa16   :  { %v4789_v21 = vpop.f32.mrb[31].mxu0  ;;  %v4841_v22 = vpop.f32.mrb[31].mxu1 }
 0xa1b   :  { %v2435_v23 = vpop.f32.mrb[32].mxu0 }
 0xa1c   :  { %v2441_v25 = vpack.c.bf16 %v2435_v23, %v2435_v23  ;;  %v4794_v26 = vpop.f32.mrb[33].mxu0 }
 0xa1d   :  { %v2438_v27 = vpop.f32.mrb[34].mxu0 }
 0xa1e   :  { %v4795_v28 = vpop.f32.mrb[35].mxu0  ;;  %4813 = vmatmul.mubr.bf16.vlgmr.msra.gmra.mrb[36].mxu0 %v2441_v25  ;;  %v2961_v27 = vld [vmem:[#allocation23] sm:$0x1] }
 0xa1f   :  { %4817 = vmatpush3.bf16.msra.mxu0 %v5349_v24  ;;  %4832 = vmatprep.mubr.msk.bf16.mxu0 %vm5750_vm2, %v5751_v29 }
 0xa20   :  { %4818 = vmatprep.subr.bf16.mxu0 %v5751_v29 }
 0xa23   :  { %4819 = vmatpush3.bf16.msra.mxu0 %v5350_v30  ;;  %v2965_v30 = vld [vmem:[%s6874_s18] sm:$0x1] }
 0xa24   :  { %4820 = vmatprep.subr.bf16.mxu0 %v5751_v29 }
 0xa27   :  { %4821 = vmatpush3.bf16.msra.mxu0 %v5351_v35 }
 0xa28   :  { %4822 = vmatprep.subr.bf16.mxu0 %v5751_v29 }
 0xa2b   :  { %4823 = vmatpush3.bf16.msra.mxu0 %v5352_v38 }
 0xa2c   :  { %4824 = vmatprep.subr.bf16.mxu0 %v5751_v29 }
 0xa2f   :  { %4825 = vmatpush3.bf16.msra.mxu0 %v5353_v39 }
 0xa30   :  { %4826 = vmatprep.subr.bf16.mxu0 %v5751_v29 }
 0xa33   :  { %4827 = vmatpush3.bf16.msra.mxu0 %v5354_v33 }
 0xa34   :  { %4828 = vmatprep.subr.bf16.mxu0 %v5751_v29 }
 0xa37   :  { %4829 = vmatpush3.bf16.msra.mxu0 %v5355_v40 }
 0xa38   :  { %4830 = vmatprep.subr.bf16.mxu0 %v5751_v29 }
 0xa3b   :  { %4831 = vmatpush3.bf16.msra.mxu0 %v5356_v36 }
 0xa3c   :  { %4842 = vmatprep.subr.bf16.mxu0 %v5751_v29 }
 0xa3e   :  { %4833 = vmatmul.mubr.bf16.vlgmr.msra.gmra.mrb[36].mxu0 %v2379_v42 }
 0xa3f   :  { %4843 = vmatpush3.bf16.msra.mxu0 %v5357_v41  ;;  %4858 = vmatprep.mubr.msk.bf16.mxu0 %vm5750_vm2, %v5751_v29 }
 0xa40   :  { %4844 = vmatprep.subr.bf16.mxu0 %v5751_v29 }
 0xa43   :  { %4845 = vmatpush3.bf16.msra.mxu0 %v5358_v43 }
 0xa44   :  { %4846 = vmatprep.subr.bf16.mxu0 %v5751_v29 }
 0xa47   :  { %4847 = vmatpush3.bf16.msra.mxu0 %v5359_v44 }
 0xa48   :  { %4848 = vmatprep.subr.bf16.mxu0 %v5751_v29 }
 0xa4b   :  { %4849 = vmatpush3.bf16.msra.mxu0 %v5360_v45 }
 0xa4c   :  { %4850 = vmatprep.subr.bf16.mxu0 %v5751_v29 }
 0xa4f   :  { %4851 = vmatpush3.bf16.msra.mxu0 %v5361_v46 }
 0xa50   :  { %4852 = vmatprep.subr.bf16.mxu0 %v5751_v29 }
 0xa53   :  { %4853 = vmatpush3.bf16.msra.mxu0 %v5362_v47 }
 0xa54   :  { %4854 = vmatprep.subr.bf16.mxu0 %v5751_v29 }
 0xa57   :  { %4855 = vmatpush3.bf16.msra.mxu0 %v5363_v48 }
 0xa58   :  { %4856 = vmatprep.subr.bf16.mxu0 %v5751_v29 }
 0xa5b   :  { %4857 = vmatpush3.bf16.msra.mxu0 %v5364_v49  ;;  %v4006_v49 = vld [vmem:[%s6875_s19 + $0x1] sm:$0x1] }
 0xa5c   :  { %5208 = vmatprep.subr.bf16.mxu0 %v5749_v31 }
 0xa5e   :  { %4859 = vmatmul.mubr.bf16.vlgmr.msra.gmra.mrb[36].mxu0 %v2680_v50  ;;  %v5365_v50 = vld [vmem:[%s6876_s20 + $0x40] sm:$0xff]  }
 0xa5f   :  { %4940 = vmatprep.mubr.msk.f32.mxu0 %vm5750_vm2, %v5751_v29 }
 0xb31   :  { %v6650_v59 = vpop.f32.mrb[36].mxu0 }
 0xb32   :  { %v2787_v61 = vrot.slane %v6650_v59, 4  ;;  %v4860_v62 = vpop.f32.mrb[37].mxu0  ;;  %v2793_v9 = vmul.f32 %v6650_v59, %v6650_v59 }
 0xb33   :  { %v2783_v0 = vpop.f32.mrb[38].mxu0  ;;  %v5377_v62 = vld [vmem:[%s6876_s20 + $0x70] sm:$0xff]  }
 0xb34   :  { %v2788_v1 = vadd.f32 %v2787_v61, %v6650_v59  ;;  %v4861_v2 = vpop.f32.mrb[39].mxu0  ;;  %v2794_v10 = vrot.slane %v2793_v9, 4  ;;  %v5376_v61 = vld [vmem:[%s6876_s20 + $0x28] sm:$0xff]   ;;  %v5378_v0 = vld [vmem:[%s6876_s20 + $0x30] sm:$0xff]  }
 0xb35   :  { %v5380_v2 = vld [vmem:[%s6876_s20 + $0x38] sm:$0xff]  }
 0xb36   :  { %v2789_v3 = vrot.slane %v2788_v1, 2 }
 0xb38   :  { %v2790_v4 = vadd.f32 %v2789_v3, %v2788_v1  ;;  %v5379_v1 = vld [vmem:[%s6876_s20 + $0x78] sm:$0xff]  }
 0xb3a   :  { %v2791_v5 = vrot.slane %v2790_v4, 1 }
 0xb3c   :  { %v2792_v7 = vadd.f32 %v2791_v5, %v2790_v4 }
 0xb3e   :  { %4895 = vmatmul.mubr.f32.vlgmr.msra.gmra.mrb[32].mxu1 %v2792_v7 }
 0xb3f   :  { %5186 = vmatpush3.bf16.msra.mxu1 %v6553_v6  ;;  %4929 = vmatprep.mubr.msk.f32.mxu1 %vm5750_vm2, %v5751_v29  ;;  %v2795_v6 = vadd.f32 %v2794_v10, %v2793_v9 }
 0xb40   :  { %5187 = vmatprep.subr.bf16.mxu1 %v5749_v31 }
 0xb41   :  { %v2796_v12 = vrot.slane %v2795_v6, 2 }
 0xb43   :  { %5189 = vmatpush3.bf16.msra.mxu1 %v6556_v8  ;;  %v2797_v8 = vadd.f32 %v2796_v12, %v2795_v6  ;;  %v5381_v6 = vld [vmem:[%s6876_s20 + $0x80] sm:$0xff]  }
 0xb44   :  { %5190 = vmatprep.subr.bf16.mxu1 %v5749_v31 }
 0xb47   :  { %5192 = vmatpush3.bf16.msra.mxu1 %v6560_v11  ;;  %v2798_v11 = vrot.slane %v2797_v8, 1 }
 0xb48   :  { %5193 = vmatprep.subr.bf16.mxu1 %v5749_v31 }
 0xb49   :  { %v2799_v14 = vadd.f32 %v2798_v11, %v2797_v8 }
 0xb4b   :  { %5195 = vmatpush3.bf16.msra.mxu1 %v6564_v15  ;;  %v2968_v15 = vld [vmem:[#allocation22] sm:$0xff] }
 0xb4c   :  { %5196 = vmatprep.subr.bf16.mxu1 %v5749_v31 }
 0xb4f   :  { %5198 = vmatpush3.bf16.msra.mxu1 %v6568_v60  ;;  %v5209_v60 = vpack.c.bf16 %v2969_v57, %v2968_v15  ;;  %v5382_v15 = vld [vmem:[%s6876_s20 + $0x88] sm:$0xff]   ;;  %v4040_v57 = vld [vmem:[%s6875_s19 + $0x2] sm:$0x1] }
 0xb50   :  { %5199 = vmatprep.subr.bf16.mxu1 %v5749_v31 }
 0xb51   :  { %5210 = vmatpush3.bf16.msra.mxu0 %v5209_v60 }
 0xb52   :  { %5211 = vmatprep.subr.bf16.mxu0 %v5749_v31 }
 0xb53   :  { %5201 = vmatpush3.bf16.msra.mxu1 %v5176_v53  ;;  %v5368_v53 = vld [vmem:[%s6876_s20 + $0x8] sm:$0xff]  }
 0xb54   :  { %5202 = vmatprep.subr.bf16.mxu1 %v5749_v31 }
 0xb55   :  { %5213 = vmatpush3.bf16.msra.mxu0 %v5212_v63 }
 0xb56   :  { %4954 = vmatprep.subr.bf16.mxu0 %v5751_v29 }
 0xb57   :  { %5204 = vmatpush3.bf16.msra.mxu1 %v5179_v56  ;;  %v5371_v56 = vld [vmem:[%s6876_s20 + $0x58] sm:$0xff]  }
 0xb58   :  { %5205 = vmatprep.subr.bf16.mxu1 %v5749_v31 }
 0xb5b   :  { %5207 = vmatpush3.bf16.msra.mxu1 %v5182_v58  ;;  %v5374_v58 = vld [vmem:[%s6876_s20 + $0x20] sm:$0xff]  }
 0xb5c   :  { %5214 = vmatprep.subr.bf16.mxu1 %v5749_v31 }
 0xb5e   :  { %4930 = vmatmul.mubr.f32.vlgmr.msra.gmra.mrb[34].mxu1 %v2799_v14 }
 0xb5f   :  { %4951 = vmatprep.mubr.msk.f32.mxu1 %vm5750_vm2, %v5751_v29  ;;  %5216 = vmatpush3.bf16.msra.mxu1 %v5209_v60  ;;  %v5385_v60 = vld [vmem:[%s6876_s20 + $0x98] sm:$0xff]  }
 0xb60   :  { %5217 = vmatprep.subr.bf16.mxu1 %v5749_v31 }
 0xb63   :  { %5219 = vmatpush3.bf16.msra.mxu1 %v5212_v63  ;;  %v5384_v63 = vld [vmem:[%s6876_s20 + $0xc0] sm:$0xff]  }
 0xb64   :  { %4960 = vmatprep.subr.bf16.mxu1 %v5751_v29 }
 0xc11   :  { %v2882_v17 = vpop.f32.mrb[32].mxu1 }
 0xc12   :  { %v4896_v18 = vpop.f32.mrb[33].mxu1  ;;  %v2886_v19 = vmul.f32 0.03125, %v2882_v17  ;;  %v5387_v17 = vld [vmem:[%s6876_s20 + $0xa0] sm:$0xff]  }
 0xc13   :  { %v5386_v18 = vld [vmem:[%s6876_s20 + $0xc8] sm:$0xff]  }
 0xc14   :  { %v2958_v21 = vmul.f32 %v2886_v19, %v2886_v19 }
 0xc31   :  { %v2953_v20 = vpop.f32.mrb[34].mxu1 }
 0xc32   :  { %v2957_v22 = vmul.f32 0.03125, %v2953_v20  ;;  %v4931_v23 = vpop.f32.mrb[35].mxu1  ;;  %v5389_v20 = vld [vmem:[%s6876_s20 + $0xa8] sm:$0xff]  }
 0xc33   :  { %v5392_v23 = vld [vmem:[%s6876_s20 + $0xe0] sm:$0xff]  }
 0xc34   :  { %v2959_v24 = vsub.f32 %v2957_v22, %v2958_v21  ;;  %v5390_v21 = vld [vmem:[%s6876_s20 + $0xd8] sm:$0xff]   ;;  %v5391_v22 = vld [vmem:[%s6876_s20 + $0xb0] sm:$0xff]  }
 0xc36   :  { %v2960_v25 = vmax.f32 %v2959_v24, 0.0  ;;  %v5393_v24 = vld [vmem:[%s6876_s20 + $0xb8] sm:$0xff]  }
 0xc38   :  { %v2962_v26 = vadd.f32 1e-05, %v2960_v25  ;;  %v5394_v25 = vld [vmem:[%s6876_s20 + $0xe8] sm:$0xff]  }
 0xc3a   :  { %5401 = vrsqrt.f32 %v2962_v26  ;;  %v5395_v26 = vld [vmem:[%s6876_s20 + $0xf0] sm:$0xff]  }
 0xc44   :  { %v5402_v28 = vpop.eup %5401 }
 0xc45   :  { %v2964_v31 = vmul.f32 %v5402_v28, %v2961_v27  ;;  %v5396_v27 = vld [vmem:[%s6876_s20 + $0xf8] sm:$0xff]  }
 0xc47   :  { %4941 = vmatmul.mubr.msk.f32.vlgmr.msra.gmra.mrb[40].mxu0 %vm1351_vm8, %v2964_v31  ;;  %v2966_v35 = vmul.f32 %v2964_v31, %v2886_v19  ;;  %v5388_v19 = vld [vmem:[%s6876_s20 + $0xd0] sm:$0xff]  }
 0xc48   :  { %4956 = vmatprep.mubr.msk.bf16.mxu0 %vm5750_vm2, %v5751_v29 }
 0xc49   :  { %v2967_v38 = vsub.f32 %v2965_v30, %v2966_v35 }
 0xc4b   :  { %4952 = vmatmul.mubr.msk.f32.vlgmr.msra.gmra.mrb[36].mxu1 %vm1351_vm8, %v2967_v38 }
 0xc4c   :  { %4962 = vmatprep.mubr.msk.bf16.mxu1 %vm5750_vm2, %v5751_v29 }
 0xd1a   :  { %v3041_v39 = vpop.f32.mrb[40].mxu0 }
 0xd1b   :  { %v3121_v33 = vrot.slane %v3041_v39, %v6278_v13  ;;  %v4942_v40 = vpop.f32.mrb[41].mxu0 }
 0xd1d   :  { %v3122_v36 = vmul.f32 %v3121_v33, %v6650_v59  ;;  %v5375_v59 = vld [vmem:[%s6876_s20 + $0x68] sm:$0xff]  }
 0xd1e   :  { %v3114_v41 = vpop.f32.mrb[36].mxu1 }
 0xd1f   :  { %v3126_v42 = vrot.slane %v3114_v41, %v6278_v13  ;;  %v4953_v43 = vpop.f32.mrb[37].mxu1  ;;  %v3132_v13 = vld [vmem:[%s6875_s19] sm:$0x1] }
 0xd21   :  { %v3127_v44 = vadd.f32 %v3126_v42, %v3122_v36 }
 0xd23   :  { %vm3128_vm12 = vcmp.ge.f32.partialorder %v3127_v44, 0.0  ;;  %v3129_v45 = vmul.f32 0.2, %v3127_v44 }
 0xd25   :  { %v3130_v46 = vsel %vm3128_vm12, %v3127_v44, %v3129_v45 }
 0xd26   :  { %v3131_v47 = vpack.c.bf16 %v3130_v46, %v3130_v46 }
 0xd28   :  { %v6689_v48 = vsel %vm3136_vm13, %v3131_v47, 0 }
 0xd29   :  { %4955 = vmatpush3.bf16.msra.mxu0 %v6689_v48  ;;  %4961 = vmatpush3.bf16.msra.mxu1 %v6689_v48 }
 0xd2a   :  { %4966 = vmatprep.subr.bf16.mxu0 %v5751_v29  ;;  %4986 = vmatprep.subr.bf16.mxu1 %v5751_v29 }
 0xd2c   :  { %4963 = vmatmul.mubr.msk.bf16.vlgmr.msra.gmra.mrb[40].mxu1 %vm1167_vm3, %v4006_v49  ;;  %4957 = vmatmul.mubr.msk.bf16.vlgmr.msra.gmra.mrb[44].mxu0 %vm1167_vm3, %v3132_v13 }
 0xd2d   :  { %4967 = vmatpush3.bf16.msra.mxu0 %v5365_v50  ;;  %4987 = vmatpush3.bf16.msra.mxu1 %v5366_v51 }
 0xd2e   :  { %4968 = vmatprep.subr.bf16.mxu0 %v5751_v29  ;;  %4988 = vmatprep.subr.bf16.mxu1 %v5751_v29 }
 0xd2f   :  { %4982 = vmatprep.mubr.msk.bf16.mxu0 %vm5750_vm2, %v5751_v29  ;;  %5002 = vmatprep.mubr.msk.bf16.mxu1 %vm5750_vm2, %v5751_v29 }
 0xd31   :  { %4969 = vmatpush3.bf16.msra.mxu0 %v5367_v52  ;;  %4989 = vmatpush3.bf16.msra.mxu1 %v5368_v53 }
 0xd32   :  { %4970 = vmatprep.subr.bf16.mxu0 %v5751_v29  ;;  %4990 = vmatprep.subr.bf16.mxu1 %v5751_v29 }
 0xd35   :  { %4971 = vmatpush3.bf16.msra.mxu0 %v5369_v54  ;;  %4991 = vmatpush3.bf16.msra.mxu1 %v5370_v55  ;;  %v4092_v55 = vld [vmem:[#allocation2] ss:$0 sm:$0xff] }
 0xd36   :  { %4972 = vmatprep.subr.bf16.mxu0 %v5751_v29  ;;  %4992 = vmatprep.subr.bf16.mxu1 %v5751_v29 }
 0xd39   :  { %4973 = vmatpush3.bf16.msra.mxu0 %v5371_v56  ;;  %4993 = vmatpush3.bf16.msra.mxu1 %v5372_v32 }
 0xd3a   :  { %4974 = vmatprep.subr.bf16.mxu0 %v5751_v29  ;;  %4994 = vmatprep.subr.bf16.mxu1 %v5751_v29 }
 0xd3d   :  { %4975 = vmatpush3.bf16.msra.mxu0 %v5373_v34  ;;  %4995 = vmatpush3.bf16.msra.mxu1 %v5374_v58 }
 0xd3e   :  { %4976 = vmatprep.subr.bf16.mxu0 %v5751_v29  ;;  %4996 = vmatprep.subr.bf16.mxu1 %v5751_v29 }
 0xd41   :  { %4977 = vmatpush3.bf16.msra.mxu0 %v5375_v59  ;;  %4997 = vmatpush3.bf16.msra.mxu1 %v5376_v61 }
 0xd42   :  { %4978 = vmatprep.subr.bf16.mxu0 %v5751_v29  ;;  %4998 = vmatprep.subr.bf16.mxu1 %v5751_v29 }
 0xd45   :  { %4979 = vmatpush3.bf16.msra.mxu0 %v5377_v62  ;;  %4999 = vmatpush3.bf16.msra.mxu1 %v5378_v0 }
 0xd46   :  { %4980 = vmatprep.subr.bf16.mxu0 %v5751_v29  ;;  %5000 = vmatprep.subr.bf16.mxu1 %v5751_v29 }
 0xd49   :  { %4981 = vmatpush3.bf16.msra.mxu0 %v5379_v1  ;;  %5001 = vmatpush3.bf16.msra.mxu1 %v5380_v2 }
 0xd4a   :  { %5006 = vmatprep.subr.bf16.mxu0 %v5751_v29  ;;  %5012 = vmatprep.subr.bf16.mxu1 %v5751_v29 }
 0xdff   :  { %v3236_v3 = vpop.f32.mrb[40].mxu1  ;;  %v3174_v4 = vpop.f32.mrb[44].mxu0 }
 0xe00   :  { %v3242_v5 = vpack.c.bf16 %v3236_v3, %v3236_v3  ;;  %v3180_v7 = vpack.c.bf16 %v3174_v4, %v3174_v4  ;;  %v4964_v9 = vpop.f32.mrb[41].mxu1  ;;  %v4958_v10 = vpop.f32.mrb[45].mxu0 }
 0xe01   :  { %v3239_v12 = vpop.f32.mrb[42].mxu1  ;;  %v3177_v8 = vpop.f32.mrb[46].mxu0 }
 0xe02   :  { %v4965_v11 = vpop.f32.mrb[43].mxu1  ;;  %4983 = vmatmul.mubr.bf16.vlgmr.msra.gmra.mrb[48].mxu0 %v3242_v5  ;;  %5003 = vmatmul.mubr.bf16.vlgmr.msra.gmra.mrb[44].mxu1 %v3180_v7  ;;  %v4959_v14 = vpop.f32.mrb[47].mxu0 }
 0xe03   :  { %5007 = vmatpush3.bf16.msra.mxu0 %v6689_v48  ;;  %5008 = vmatprep.mubr.msk.bf16.mxu0 %vm5750_vm2, %v5751_v29 }
 0xe04   :  { %5032 = vmatprep.subr.bf16.mxu0 %v5751_v29  ;;  %5013 = vmatpush3.bf16.msra.mxu1 %v5381_v6 }
 0xe05   :  { %5014 = vmatprep.subr.bf16.mxu1 %v5751_v29  ;;  %5028 = vmatprep.mubr.msk.bf16.mxu1 %vm5750_vm2, %v5751_v29 }
 0xe08   :  { %5015 = vmatpush3.bf16.msra.mxu1 %v5382_v15 }
 0xe09   :  { %5016 = vmatprep.subr.bf16.mxu1 %v5751_v29 }
 0xe0a   :  { %5009 = vmatmul.mubr.msk.bf16.vlgmr.msra.gmra.mrb[52].mxu0 %vm1167_vm3, %v4040_v57 }
 0xe0b   :  { %5033 = vmatpush3.bf16.msra.mxu0 %v6689_v48  ;;  %5034 = vmatprep.mubr.msk.bf16.mxu0 %vm5750_vm2, %v5751_v29 }
 0xe0c   :  { %5038 = vmatprep.subr.bf16.mxu0 %v5751_v29  ;;  %5017 = vmatpush3.bf16.msra.mxu1 %v5383_v37 }
 0xe0d   :  { %5018 = vmatprep.subr.bf16.mxu1 %v5751_v29 }
 0xe10   :  { %5019 = vmatpush3.bf16.msra.mxu1 %v5385_v60 }
 0xe11   :  { %5020 = vmatprep.subr.bf16.mxu1 %v5751_v29 }
 0xe12   :  { %5035 = vmatmul.mubr.msk.bf16.vlgmr.msra.gmra.mrb[56].mxu0 %vm1167_vm3, %v4066_v16 }
 0xe13   :  { %5039 = vmatpush3.bf16.msra.mxu0 %v5384_v63  ;;  %5054 = vmatprep.mubr.msk.bf16.mxu0 %vm5750_vm2, %v5751_v29 }
 0xe14   :  { %5040 = vmatprep.subr.bf16.mxu0 %v5751_v29  ;;  %5021 = vmatpush3.bf16.msra.mxu1 %v5387_v17 }
 0xe15   :  { %5022 = vmatprep.subr.bf16.mxu1 %v5751_v29 }
 0xe17   :  { %5041 = vmatpush3.bf16.msra.mxu0 %v5386_v18 }
 0xe18   :  { %5042 = vmatprep.subr.bf16.mxu0 %v5751_v29  ;;  %5023 = vmatpush3.bf16.msra.mxu1 %v5389_v20 }
 0xe19   :  { %5024 = vmatprep.subr.bf16.mxu1 %v5751_v29 }
 0xe1b   :  { %5043 = vmatpush3.bf16.msra.mxu0 %v5388_v19 }
 0xe1c   :  { %5044 = vmatprep.subr.bf16.mxu0 %v5751_v29  ;;  %5025 = vmatpush3.bf16.msra.mxu1 %v5391_v22 }
 0xe1d   :  { %5026 = vmatprep.subr.bf16.mxu1 %v5751_v29 }
 0xe1f   :  { %5045 = vmatpush3.bf16.msra.mxu0 %v5390_v21 }
 0xe20   :  { %5046 = vmatprep.subr.bf16.mxu0 %v5751_v29  ;;  %5027 = vmatpush3.bf16.msra.mxu1 %v5393_v24 }
 0xe23   :  { %5047 = vmatpush3.bf16.msra.mxu0 %v5392_v23 }
 0xe24   :  { %5048 = vmatprep.subr.bf16.mxu0 %v5751_v29 }
 0xe27   :  { %5049 = vmatpush3.bf16.msra.mxu0 %v5394_v25 }
 0xe28   :  { %5050 = vmatprep.subr.bf16.mxu0 %v5751_v29 }
 0xe2b   :  { %5051 = vmatpush3.bf16.msra.mxu0 %v5395_v26 }
 0xe2c   :  { %5052 = vmatprep.subr.bf16.mxu0 %v5751_v29 }
 0xe2f   :  { %5053 = vmatpush3.bf16.msra.mxu0 %v5396_v27 }
 0xed5   :  { %v3342_v28 = vpop.f32.mrb[48].mxu0  ;;  %v3430_v31 = vpop.f32.mrb[44].mxu1 }
 0xed6   :  { %v4984_v30 = vpop.f32.mrb[49].mxu0  ;;  %v3431_v35 = vadd.f32 %v3430_v31, %v3342_v28  ;;  %v5004_v38 = vpop.f32.mrb[45].mxu1 }
 0xed7   :  { %v3345_v39 = vpop.f32.mrb[50].mxu0  ;;  %v3433_v33 = vpop.f32.mrb[46].mxu1 }
 0xed8   :  { %v4985_v40 = vpop.f32.mrb[51].mxu0  ;;  %v5005_v36 = vpop.f32.mrb[47].mxu1 }
 0xedd   :  { %v3475_v41 = vpop.f32.mrb[52].mxu0 }
 0xede   :  { %v3481_v42 = vpack.c.bf16 %v3475_v41, %v3475_v41  ;;  %v5010_v43 = vpop.f32.mrb[53].mxu0 }
 0xedf   :  { %v3478_v44 = vpop.f32.mrb[54].mxu0 }
 0xee0   :  { %v5011_v45 = vpop.f32.mrb[55].mxu0  ;;  %5029 = vmatmul.mubr.bf16.vlgmr.msra.gmra.mrb[48].mxu1 %v3481_v42 }
 0xee5   :  { %v3627_v29 = vpop.f32.mrb[56].mxu0 }
 0xee6   :  { %v3633_v46 = vpack.c.bf16 %v3627_v29, %v3627_v29  ;;  %v5036_v47 = vpop.f32.mrb[57].mxu0 }
 0xee7   :  { %v3630_v48 = vpop.f32.mrb[58].mxu0 }
 0xee8   :  { %v5037_v49 = vpop.f32.mrb[59].mxu0  ;;  %5055 = vmatmul.mubr.bf16.vlgmr.msra.gmra.mrb[60].mxu0 %v3633_v46 }
 0xfb3   :  { %v3581_v13 = vpop.f32.mrb[48].mxu1 }
 0xfb4   :  { %v3587_v50 = vadd.f32 %v3581_v13, %v3431_v35  ;;  %v5030_v51 = vpop.f32.mrb[49].mxu1 }
 0xfb5   :  { %v3584_v52 = vpop.f32.mrb[50].mxu1 }
 0xfb6   :  { %v5031_v53 = vpop.f32.mrb[51].mxu1 }
 0xfbb   :  { %v3733_v54 = vpop.f32.mrb[60].mxu0 }
 0xfbc   :  { %v3739_v56 = vadd.f32 %v3733_v54, %v3587_v50  ;;  %v5056_v32 = vpop.f32.mrb[61].mxu0 }
 0xfbd   :  { %v3736_v34 = vpop.f32.mrb[62].mxu0 }
 0xfbe   :  { %v3747_v58 = vadd.f32 %v4092_v55, %v3739_v56  ;;  %v5057_v59 = vpop.f32.mrb[63].mxu0 }
 0xfc0   :  { %v3748_v61 = vsub.f32 0.0, %v3747_v58 }
 0xfc2   :  { %v3749_v62 = vmul.f32 1.442695, %v3748_v61 }
 0xfc4   :  { %5403 = vpow2.f32 %v3749_v62 }
 0xfce   :  { %v5404_v0 = vpop.eup %5403 }
 0xfcf   :  { %v3751_v1 = vadd.f32 1.0, %v5404_v0 }
 0xfd1   :  { %5405 = vrcp.f32 %v3751_v1 }
 0xfdb   :  { %v5406_v2 = vpop.eup %5405 }
 0xfdc   :  { %3755 = vst.msk [vmem:[%s6901_s28] sm:$0x3] %vm3754_vm14, %v5406_v2 }
 0xfdd   :  { %3760 = vsyncpa [#allocation4], 1 }
 0xfde   :  { %3761 = vsyncpa [#allocation6], 1 }
 0xfdf   :  { %3762 = vsyncpa [#allocation9], 1 }
 0xfe0   :  { %3763 = vsyncpa [#allocation12], 1 }
 0xfe1   :  { %3764 = vsyncpa [#allocation15], 1 }
 0xfe2   :  { %3765 = vsyncpa [#allocation18], 1 }
 0xfe3   :  { %3766 = vsyncpa [#allocation21], 1 }
 0xfe4   :  { %3767 = vsyncpa [#allocation24], 1 }

</bundles_post_ra>
